<compile_context>
chip_gen: v6e
topology: v6e:2x2x1
jax: 0.10.0
libtpu: 0.0.40
codegen_flags: <defaults>
</compile_context>

<pallas_src>
import math

import jax
import jax.numpy as jnp
from jax import lax
from jax.experimental import pallas as pl
from jax.experimental.pallas import tpu as pltpu  # noqa: F401  (TPU backend)

# ---- config (only the fields TransformerEncoder.forward actually uses) ----
SRC_VOCAB = 50
EMB = 32            # config.emb_size (== config.hidden_size, required by residuals)
HID = 32            # config.hidden_size
HEADS = 4           # config.heads
D_FF = 64           # config.d_ff
N_LAYERS = 2        # config.enc_num_layers
HEAD_DIM = HID // HEADS
PAD_IDX = 0

NEG_INF = -1e18     # masked_fill value used by OpenNMT-style Multihead_Attention
LN_EPS = 1e-6

# rows of the packed per-layer vector slab (L+1, 8, 128); slab L = final LN
ROW_LN1_G, ROW_LN1_B = 0, 1
ROW_BO = 2                       # bo' = bo + Wo^T @ bv   (W_o/bv fold)
ROW_LN2_G, ROW_LN2_B = 3, 4
ROW_B1, ROW_B2 = 5, 6
ROW_FIN_G, ROW_FIN_B = 0, 1      # in the final (index N_LAYERS) slab
VEC_ROWS, VEC_COLS = 8, 128

# slots of the packed attention-weight slab (L*HEADS*4, H, H)
SLOT_WQ, SLOT_WK, SLOT_WVO, SLOT_B = 0, 1, 2, 3
N_SLOTS = 4


# --------------------------- in-kernel helpers -----------------------------
def _ln(v, g, b):
    mu = jnp.mean(v, axis=-1, keepdims=True)
    var = jnp.mean(jnp.square(v - mu), axis=-1, keepdims=True)
    return (v - mu) * lax.rsqrt(var + LN_EPS) * g + b


# ------------------------------ fused kernel -------------------------------
def _encoder_kernel(x0_ref, bias_ref, whead_ref, w1_ref, w2_ref, vecs_ref,
                    out_ref):
    """Entire encoder forward (N layers + final LN) in one gridless call.

    x0_ref   : (B*S, H)             emb*sqrt(dim)+pe, already flattened
    bias_ref : (B, 1, S)            additive key-padding bias (0 or -1e18)
    whead_ref: (L*HEADS*4, H, H)    [Wq*scale | Wk | Wv@Wo_slice | bias rows]
    w1_ref   : (L, H, F)            FFN weights
    w2_ref   : (L, F, H)
    vecs_ref : (L+1, 8, 128)        packed per-layer vectors + final LN
    out_ref  : (B*S, H)
    """
    B = bias_ref.shape[0]
    S = bias_ref.shape[2]

    x = x0_ref[...]                                            # (B*S, H)
    # hoist the (B,1,S)->(B,S,S) broadcast out of the head loop
    bias = jnp.broadcast_to(bias_ref[...], (B, S, S))          # (B, S, S)

    for l in range(N_LAYERS):                 # static unroll, weights resident
        vl = vecs_ref[l]                                       # (8, 128)
        ln1_g = vl[ROW_LN1_G:ROW_LN1_G + 1, :HID]
        ln1_b = vl[ROW_LN1_B:ROW_LN1_B + 1, :HID]
        bo    = vl[ROW_BO:ROW_BO + 1, :HID]
        ln2_g = vl[ROW_LN2_G:ROW_LN2_G + 1, :HID]
        ln2_b = vl[ROW_LN2_B:ROW_LN2_B + 1, :HID]
        b1    = vl[ROW_B1:ROW_B1 + 1, :D_FF]
        b2    = vl[ROW_B2:ROW_B2 + 1, :HID]

        # ---- self attention (pre-LN, OpenNMT Multihead_Attention semantics) ----
        h = _ln(x, ln1_g, ln1_b)                               # (B*S, H)
        acc = x + bo                # residual + folded output/value bias
        for hd in range(HEADS):                                # static unroll
            base = (l * HEADS + hd) * N_SLOTS                  # static int
            bqk = whead_ref[base + SLOT_B]                     # (H, H) rows 0/1
            # per-head projections straight from h; weights selected by
            # leading-dim index (no lane slicing anywhere in the head loop)
            q = jnp.dot(h, whead_ref[base + SLOT_WQ],
                        preferred_element_type=jnp.float32) + bqk[0:1, :]
            k = jnp.dot(h, whead_ref[base + SLOT_WK],
                        preferred_element_type=jnp.float32) + bqk[1:2, :]
            v = jnp.dot(h, whead_ref[base + SLOT_WVO],
                        preferred_element_type=jnp.float32)    # (B*S, H), W_o folded
            # Wq/Wk are zero-padded beyond HEAD_DIM, so contracting over the
            # full H lanes gives exactly the per-head scores; 1/sqrt(d) is
            # already folded into Wq/bq.
            s = jnp.einsum('bqd,bkd->bqk',
                           q.reshape(B, S, HID), k.reshape(B, S, HID),
                           preferred_element_type=jnp.float32) + bias
            s = s - jnp.max(s, axis=-1, keepdims=True)
            e = jnp.exp(s)
            p = e * pl.reciprocal(jnp.sum(e, axis=-1, keepdims=True), approx=True)
            ctx = jnp.einsum('bqk,bkd->bqd', p, v.reshape(B, S, HID),
                             preferred_element_type=jnp.float32)   # (B, S, H)
            acc = acc + ctx.reshape(B * S, HID)
        x1 = acc                                    # dropout(context) + inputs

        # ---- PositionwiseFeedForward: w2(relu(w1(LN(x)))) + x ----
        h2 = _ln(x1, ln2_g, ln2_b)
        inter = jnp.maximum(
            jnp.dot(h2, w1_ref[l], preferred_element_type=jnp.float32) + b1, 0.0)
        x = jnp.dot(inter, w2_ref[l], preferred_element_type=jnp.float32) + b2 + x1

    # ---- final LayerNorm (folded into the last vecs slab) ----
    fin = vecs_ref[N_LAYERS]
    out_ref[...] = _ln(x, fin[ROW_FIN_G:ROW_FIN_G + 1, :HID],
                       fin[ROW_FIN_B:ROW_FIN_B + 1, :HID])


# -------------------------------- wrapper -----------------------------------
def transformer_encoder_forward(src, params):
    """src: (S, B) int32 token ids; returns (S, B, HID) float32."""
    S, B = src.shape
    src_b = src.T                                                  # (B, S)

    # embedding gather + pos-enc scaling fuse into one tiny XLA op
    emb = params["embedding"][src_b]                               # (B, S, EMB)
    x0 = (emb * math.sqrt(EMB) + params["pe"][:S][None, :, :]).reshape(B * S, EMB)
    attn_bias = jnp.where(src_b == PAD_IDX, NEG_INF,
                          0.0).astype(jnp.float32)[:, None, :]     # (B, 1, S)

    out2 = pl.pallas_call(
        _encoder_kernel,
        out_shape=jax.ShapeDtypeStruct((B * S, HID), jnp.float32),
    )(x0, attn_bias, params["whead"], params["w1"], params["w2"], params["vecs"])

    return out2.reshape(B, S, HID).transpose(1, 0, 2)              # (S, B, HID)


# --------------------------- deterministic init ------------------------------
def _make_pe(max_len, dim):
    pos = jnp.arange(max_len, dtype=jnp.float32)[:, None]
    div = jnp.exp(jnp.arange(0, dim, 2, dtype=jnp.float32) * -(math.log(10000.0) / dim))
    pe = jnp.zeros((max_len, dim), jnp.float32)
    pe = pe.at[:, 0::2].set(jnp.sin(pos * div))
    pe = pe.at[:, 1::2].set(jnp.cos(pos * div))
    return pe


def init_params(key):
    keys = jax.random.split(key, 1 + N_LAYERS)
    emb = 0.1 * jax.random.normal(keys[0], (SRC_VOCAB, EMB), jnp.float32)
    emb = emb.at[PAD_IDX].set(0.0)                       # padding_idx=0

    scale_q = 1.0 / math.sqrt(HEAD_DIM)
    sgm = 0.05
    whead_blocks, w1_l, w2_l, vec_l = [], [], [], []
    for k in keys[1:]:
        ks = jax.random.split(k, 12)
        n = lambda kk, shp: sgm * jax.random.normal(kk, shp, jnp.float32)
        # "reference" torch-style parameters of one layer
        wq, wk, wv, wo = (n(ks[i], (HID, HID)) for i in range(4))
        bq, bk, bv, bo = (n(ks[4 + i], (HID,)) for i in range(4))
        w1, b1 = n(ks[8], (HID, D_FF)), n(ks[9], (D_FF,))
        w2, b2 = n(ks[10], (D_FF, HID)), n(ks[11], (HID,))

        # pack per-head attention weights; heads on the leading axis
        for hd in range(HEADS):
            lo = hd * HEAD_DIM
            wq_h = jnp.zeros((HID, HID), jnp.float32).at[:, :HEAD_DIM].set(
                wq[:, lo:lo + HEAD_DIM] * scale_q)                 # scale folded
            wk_h = jnp.zeros((HID, HID), jnp.float32).at[:, :HEAD_DIM].set(
                wk[:, lo:lo + HEAD_DIM])
            wvo_h = wv[:, lo:lo + HEAD_DIM] @ wo[lo:lo + HEAD_DIM, :]   # W_o fold
            b_h = jnp.zeros((HID, HID), jnp.float32)
            b_h = b_h.at[0, :HEAD_DIM].set(bq[lo:lo + HEAD_DIM] * scale_q)
            b_h = b_h.at[1, :HEAD_DIM].set(bk[lo:lo + HEAD_DIM])
            whead_blocks.extend([wq_h, wk_h, wvo_h, b_h])

        bo_fold = bo + wo.T @ bv          # value-bias folded through W_o

        v = jnp.zeros((VEC_ROWS, VEC_COLS), jnp.float32)
        v = v.at[ROW_LN1_G, :HID].set(1.0)                # LN1 gamma (beta = 0)
        v = v.at[ROW_BO, :HID].set(bo_fold)
        v = v.at[ROW_LN2_G, :HID].set(1.0)                # LN2 gamma
        v = v.at[ROW_B1, :D_FF].set(b1)
        v = v.at[ROW_B2, :HID].set(b2)
        vec_l.append(v)
        w1_l.append(w1)
        w2_l.append(w2)

    fin = jnp.zeros((VEC_ROWS, VEC_COLS), jnp.float32).at[ROW_FIN_G, :HID].set(1.0)
    vec_l.append(fin)                                     # final LN gamma/beta

    return dict(
        embedding=emb,
        pe=_make_pe(64, EMB),
        whead=jnp.stack(whead_blocks),                    # (L*HEADS*4, H, H)
        w1=jnp.stack(w1_l), w2=jnp.stack(w2_l),           # (L, H, F), (L, F, H)
        vecs=jnp.stack(vec_l),                            # (L+1, 8, 128)
    )
    # NOTE: BiAttention / bi_attn_transform are constructed in __init__ but
    # never used in TransformerEncoder.forward, so they are omitted here.
    # TODO(synk): models.Multihead_Attention source not provided; standard
    # OpenNMT multi-head attention semantics (biased Q/K/V/out linears,
    # query/sqrt(d_head) scaling, masked_fill(-1e18) on key padding) assumed.


# --------------------------------- main --------------------------------------
if __name__ == "__main__":
    key = jax.random.PRNGKey(0)
    pkey, dkey = jax.random.split(key)
    params = init_params(pkey)

    S, B = 8, 2
    src = jax.random.randint(dkey, (S, B), 1, SRC_VOCAB).astype(jnp.int32)
    src = src.at[6:, 1].set(PAD_IDX)                  # pad tail of second sequence

    fwd = jax.jit(transformer_encoder_forward)
    out = jax.block_until_ready(fwd(src, params))
    assert out.shape == (S, B, HID) and out.dtype == jnp.float32
    assert bool(jnp.all(jnp.isfinite(out)))
    print("KERNEL_OK")
</pallas_src>

<mosaic_0001>
module attributes {stable_mosaic.version = 11 : i64} {
  func.func @_encoder_kernel(%arg0: memref<16x32xf32, #tpu.memory_space<vmem>>, %arg1: memref<2x1x8xf32, #tpu.memory_space<vmem>>, %arg2: memref<32x32x32xf32, #tpu.memory_space<vmem>>, %arg3: memref<2x32x64xf32, #tpu.memory_space<vmem>>, %arg4: memref<2x64x32xf32, #tpu.memory_space<vmem>>, %arg5: memref<3x8x128xf32, #tpu.memory_space<vmem>>, %arg6: memref<16x32xf32, #tpu.memory_space<vmem>>) attributes {dimension_semantics = [], scalar_prefetch = 0 : i64, scratch_operands = 0 : i64, tpu.core_type = #tpu.core_type<tc>} {
    %c0 = arith.constant 0 : index
    %c0_0 = arith.constant 0 : index
    %0 = vector.load %arg0[%c0, %c0_0] : memref<16x32xf32, #tpu.memory_space<vmem>>, vector<16x32xf32>
    %c0_1 = arith.constant 0 : index
    %c0_2 = arith.constant 0 : index
    %c0_3 = arith.constant 0 : index
    %1 = vector.load %arg1[%c0_1, %c0_2, %c0_3] : memref<2x1x8xf32, #tpu.memory_space<vmem>>, vector<2x1x8xf32>
    %2 = vector.shape_cast %1 : vector<2x1x8xf32> to vector<2x1x8xf32>
    %3 = vector.broadcast %2 : vector<2x1x8xf32> to vector<2x8x8xf32>
    %c0_4 = arith.constant 0 : index
    %c0_5 = arith.constant 0 : index
    %c0_6 = arith.constant 0 : index
    %4 = vector.load %arg5[%c0_4, %c0_5, %c0_6] : memref<3x8x128xf32, #tpu.memory_space<vmem>>, vector<1x8x128xf32>
    %5 = vector.shape_cast %4 : vector<1x8x128xf32> to vector<8x128xf32>
    %6 = vector.extract_strided_slice %5 {offsets = [0, 0], sizes = [1, 32], strides = [1, 1]} : vector<8x128xf32> to vector<1x32xf32>
    %7 = vector.extract_strided_slice %5 {offsets = [1, 0], sizes = [1, 32], strides = [1, 1]} : vector<8x128xf32> to vector<1x32xf32>
    %8 = vector.extract_strided_slice %5 {offsets = [2, 0], sizes = [1, 32], strides = [1, 1]} : vector<8x128xf32> to vector<1x32xf32>
    %9 = vector.extract_strided_slice %5 {offsets = [3, 0], sizes = [1, 32], strides = [1, 1]} : vector<8x128xf32> to vector<1x32xf32>
    %10 = vector.extract_strided_slice %5 {offsets = [4, 0], sizes = [1, 32], strides = [1, 1]} : vector<8x128xf32> to vector<1x32xf32>
    %11 = vector.extract_strided_slice %5 {offsets = [5, 0], sizes = [1, 64], strides = [1, 1]} : vector<8x128xf32> to vector<1x64xf32>
    %12 = vector.extract_strided_slice %5 {offsets = [6, 0], sizes = [1, 32], strides = [1, 1]} : vector<8x128xf32> to vector<1x32xf32>
    %cst = arith.constant dense<0.000000e+00> : vector<16xf32>
    %13 = vector.multi_reduction <add>, %0, %cst [1] : vector<16x32xf32> to vector<16xf32>
    %14 = vector.shape_cast %13 : vector<16xf32> to vector<16x1xf32>
    %cst_7 = arith.constant 3.200000e+01 : f32
    %15 = vector.broadcast %cst_7 : f32 to vector<16x1xf32>
    %16 = arith.divf %14, %15 : vector<16x1xf32>
    %17 = vector.broadcast %16 : vector<16x1xf32> to vector<16x32xf32>
    %18 = arith.subf %0, %17 : vector<16x32xf32>
    %19 = arith.mulf %18, %18 : vector<16x32xf32>
    %cst_8 = arith.constant dense<0.000000e+00> : vector<16xf32>
    %20 = vector.multi_reduction <add>, %19, %cst_8 [1] : vector<16x32xf32> to vector<16xf32>
    %21 = vector.shape_cast %20 : vector<16xf32> to vector<16x1xf32>
    %cst_9 = arith.constant 3.200000e+01 : f32
    %22 = vector.broadcast %cst_9 : f32 to vector<16x1xf32>
    %23 = arith.divf %21, %22 : vector<16x1xf32>
    %24 = vector.broadcast %16 : vector<16x1xf32> to vector<16x32xf32>
    %25 = arith.subf %0, %24 : vector<16x32xf32>
    %cst_10 = arith.constant 9.99999997E-7 : f32
    %26 = vector.broadcast %cst_10 : f32 to vector<16x1xf32>
    %27 = arith.addf %23, %26 : vector<16x1xf32>
    %28 = math.rsqrt %27 : vector<16x1xf32>
    %29 = vector.broadcast %28 : vector<16x1xf32> to vector<16x32xf32>
    %30 = arith.mulf %25, %29 : vector<16x32xf32>
    %31 = vector.broadcast %6 : vector<1x32xf32> to vector<16x32xf32>
    %32 = arith.mulf %30, %31 : vector<16x32xf32>
    %33 = vector.broadcast %7 : vector<1x32xf32> to vector<16x32xf32>
    %34 = arith.addf %32, %33 : vector<16x32xf32>
    %35 = vector.broadcast %8 : vector<1x32xf32> to vector<16x32xf32>
    %36 = arith.addf %0, %35 : vector<16x32xf32>
    %c3 = arith.constant 3 : index
    %c0_11 = arith.constant 0 : index
    %c0_12 = arith.constant 0 : index
    %37 = vector.load %arg2[%c3, %c0_11, %c0_12] : memref<32x32x32xf32, #tpu.memory_space<vmem>>, vector<1x32x32xf32>
    %38 = vector.shape_cast %37 : vector<1x32x32xf32> to vector<32x32xf32>
    %c0_13 = arith.constant 0 : index
    %c0_14 = arith.constant 0 : index
    %c0_15 = arith.constant 0 : index
    %39 = vector.load %arg2[%c0_13, %c0_14, %c0_15] : memref<32x32x32xf32, #tpu.memory_space<vmem>>, vector<1x32x32xf32>
    %40 = vector.shape_cast %39 : vector<1x32x32xf32> to vector<32x32xf32>
    %cst_16 = arith.constant dense<0.000000e+00> : vector<16x32xf32>
    %41 = tpu.matmul %34, %40, %cst_16 {dimension_numbers = #tpu.dot_dimension_numbers<[1], [0], [0], [1], [0, 0, 1, 1], [], []>} : vector<16x32xf32>, vector<32x32xf32>, vector<16x32xf32> -> vector<16x32xf32>
    %42 = vector.extract_strided_slice %38 {offsets = [0, 0], sizes = [1, 32], strides = [1, 1]} : vector<32x32xf32> to vector<1x32xf32>
    %43 = vector.broadcast %42 : vector<1x32xf32> to vector<16x32xf32>
    %44 = arith.addf %41, %43 : vector<16x32xf32>
    %c1 = arith.constant 1 : index
    %c0_17 = arith.constant 0 : index
    %c0_18 = arith.constant 0 : index
    %45 = vector.load %arg2[%c1, %c0_17, %c0_18] : memref<32x32x32xf32, #tpu.memory_space<vmem>>, vector<1x32x32xf32>
    %46 = vector.shape_cast %45 : vector<1x32x32xf32> to vector<32x32xf32>
    %cst_19 = arith.constant dense<0.000000e+00> : vector<16x32xf32>
    %47 = tpu.matmul %34, %46, %cst_19 {dimension_numbers = #tpu.dot_dimension_numbers<[1], [0], [0], [1], [0, 0, 1, 1], [], []>} : vector<16x32xf32>, vector<32x32xf32>, vector<16x32xf32> -> vector<16x32xf32>
    %48 = vector.extract_strided_slice %38 {offsets = [1, 0], sizes = [1, 32], strides = [1, 1]} : vector<32x32xf32> to vector<1x32xf32>
    %49 = vector.broadcast %48 : vector<1x32xf32> to vector<16x32xf32>
    %50 = arith.addf %47, %49 : vector<16x32xf32>
    %c2 = arith.constant 2 : index
    %c0_20 = arith.constant 0 : index
    %c0_21 = arith.constant 0 : index
    %51 = vector.load %arg2[%c2, %c0_20, %c0_21] : memref<32x32x32xf32, #tpu.memory_space<vmem>>, vector<1x32x32xf32>
    %52 = vector.shape_cast %51 : vector<1x32x32xf32> to vector<32x32xf32>
    %cst_22 = arith.constant dense<0.000000e+00> : vector<16x32xf32>
    %53 = tpu.matmul %34, %52, %cst_22 {dimension_numbers = #tpu.dot_dimension_numbers<[1], [0], [0], [1], [0, 0, 1, 1], [], []>} : vector<16x32xf32>, vector<32x32xf32>, vector<16x32xf32> -> vector<16x32xf32>
    %54 = vector.shape_cast %44 : vector<16x32xf32> to vector<2x8x32xf32>
    %55 = vector.shape_cast %50 : vector<16x32xf32> to vector<2x8x32xf32>
    "tpu.trace_start"() <{level = 10 : i32, message = "bqd,bkd->bqk"}> : () -> ()
    %cst_23 = arith.constant dense<0.000000e+00> : vector<2x8x8xf32>
    %56 = tpu.matmul %54, %55, %cst_23 {dimension_numbers = #tpu.dot_dimension_numbers<[2], [2], [1], [1], [0, 0, 0, 1, 1, 1], [0], [0]>} : vector<2x8x32xf32>, vector<2x8x32xf32>, vector<2x8x8xf32> -> vector<2x8x8xf32>
    "tpu.trace_stop"() : () -> ()
    %57 = arith.addf %56, %3 : vector<2x8x8xf32>
    %cst_24 = arith.constant dense<0xFF800000> : vector<2x8xf32>
    %58 = vector.multi_reduction <maximumf>, %57, %cst_24 [2] : vector<2x8x8xf32> to vector<2x8xf32>
    %59 = vector.shape_cast %58 : vector<2x8xf32> to vector<2x8x1xf32>
    %60 = vector.broadcast %59 : vector<2x8x1xf32> to vector<2x8x8xf32>
    %61 = arith.subf %57, %60 : vector<2x8x8xf32>
    %62 = math.exp %61 : vector<2x8x8xf32>
    %cst_25 = arith.constant dense<0.000000e+00> : vector<2x8xf32>
    %63 = vector.multi_reduction <add>, %62, %cst_25 [2] : vector<2x8x8xf32> to vector<2x8xf32>
    %64 = vector.shape_cast %63 : vector<2x8xf32> to vector<2x8x1xf32>
    %65 = tpu.reciprocal %64 {approx = true} : vector<2x8x1xf32> -> vector<2x8x1xf32>
    %66 = vector.broadcast %65 : vector<2x8x1xf32> to vector<2x8x8xf32>
    %67 = arith.mulf %62, %66 : vector<2x8x8xf32>
    %68 = vector.shape_cast %53 : vector<16x32xf32> to vector<2x8x32xf32>
    "tpu.trace_start"() <{level = 10 : i32, message = "bqk,bkd->bqd"}> : () -> ()
    %cst_26 = arith.constant dense<0.000000e+00> : vector<2x8x32xf32>
    %69 = tpu.matmul %67, %68, %cst_26 {dimension_numbers = #tpu.dot_dimension_numbers<[2], [1], [1], [2], [0, 0, 0, 1, 1, 2], [0], [0]>} : vector<2x8x8xf32>, vector<2x8x32xf32>, vector<2x8x32xf32> -> vector<2x8x32xf32>
    "tpu.trace_stop"() : () -> ()
    %70 = vector.shape_cast %69 : vector<2x8x32xf32> to vector<16x32xf32>
    %71 = arith.addf %36, %70 : vector<16x32xf32>
    %c7 = arith.constant 7 : index
    %c0_27 = arith.constant 0 : index
    %c0_28 = arith.constant 0 : index
    %72 = vector.load %arg2[%c7, %c0_27, %c0_28] : memref<32x32x32xf32, #tpu.memory_space<vmem>>, vector<1x32x32xf32>
    %73 = vector.shape_cast %72 : vector<1x32x32xf32> to vector<32x32xf32>
    %c4 = arith.constant 4 : index
    %c0_29 = arith.constant 0 : index
    %c0_30 = arith.constant 0 : index
    %74 = vector.load %arg2[%c4, %c0_29, %c0_30] : memref<32x32x32xf32, #tpu.memory_space<vmem>>, vector<1x32x32xf32>
    %75 = vector.shape_cast %74 : vector<1x32x32xf32> to vector<32x32xf32>
    %cst_31 = arith.constant dense<0.000000e+00> : vector<16x32xf32>
    %76 = tpu.matmul %34, %75, %cst_31 {dimension_numbers = #tpu.dot_dimension_numbers<[1], [0], [0], [1], [0, 0, 1, 1], [], []>} : vector<16x32xf32>, vector<32x32xf32>, vector<16x32xf32> -> vector<16x32xf32>
    %77 = vector.extract_strided_slice %73 {offsets = [0, 0], sizes = [1, 32], strides = [1, 1]} : vector<32x32xf32> to vector<1x32xf32>
    %78 = vector.broadcast %77 : vector<1x32xf32> to vector<16x32xf32>
    %79 = arith.addf %76, %78 : vector<16x32xf32>
    %c5 = arith.constant 5 : index
    %c0_32 = arith.constant 0 : index
    %c0_33 = arith.constant 0 : index
    %80 = vector.load %arg2[%c5, %c0_32, %c0_33] : memref<32x32x32xf32, #tpu.memory_space<vmem>>, vector<1x32x32xf32>
    %81 = vector.shape_cast %80 : vector<1x32x32xf32> to vector<32x32xf32>
    %cst_34 = arith.constant dense<0.000000e+00> : vector<16x32xf32>
    %82 = tpu.matmul %34, %81, %cst_34 {dimension_numbers = #tpu.dot_dimension_numbers<[1], [0], [0], [1], [0, 0, 1, 1], [], []>} : vector<16x32xf32>, vector<32x32xf32>, vector<16x32xf32> -> vector<16x32xf32>
    %83 = vector.extract_strided_slice %73 {offsets = [1, 0], sizes = [1, 32], strides = [1, 1]} : vector<32x32xf32> to vector<1x32xf32>
    %84 = vector.broadcast %83 : vector<1x32xf32> to vector<16x32xf32>
    %85 = arith.addf %82, %84 : vector<16x32xf32>
    %c6 = arith.constant 6 : index
    %c0_35 = arith.constant 0 : index
    %c0_36 = arith.constant 0 : index
    %86 = vector.load %arg2[%c6, %c0_35, %c0_36] : memref<32x32x32xf32, #tpu.memory_space<vmem>>, vector<1x32x32xf32>
    %87 = vector.shape_cast %86 : vector<1x32x32xf32> to vector<32x32xf32>
    %cst_37 = arith.constant dense<0.000000e+00> : vector<16x32xf32>
    %88 = tpu.matmul %34, %87, %cst_37 {dimension_numbers = #tpu.dot_dimension_numbers<[1], [0], [0], [1], [0, 0, 1, 1], [], []>} : vector<16x32xf32>, vector<32x32xf32>, vector<16x32xf32> -> vector<16x32xf32>
    %89 = vector.shape_cast %79 : vector<16x32xf32> to vector<2x8x32xf32>
    %90 = vector.shape_cast %85 : vector<16x32xf32> to vector<2x8x32xf32>
    "tpu.trace_start"() <{level = 10 : i32, message = "bqd,bkd->bqk"}> : () -> ()
    %cst_38 = arith.constant dense<0.000000e+00> : vector<2x8x8xf32>
    %91 = tpu.matmul %89, %90, %cst_38 {dimension_numbers = #tpu.dot_dimension_numbers<[2], [2], [1], [1], [0, 0, 0, 1, 1, 1], [0], [0]>} : vector<2x8x32xf32>, vector<2x8x32xf32>, vector<2x8x8xf32> -> vector<2x8x8xf32>
    "tpu.trace_stop"() : () -> ()
    %92 = arith.addf %91, %3 : vector<2x8x8xf32>
    %cst_39 = arith.constant dense<0xFF800000> : vector<2x8xf32>
    %93 = vector.multi_reduction <maximumf>, %92, %cst_39 [2] : vector<2x8x8xf32> to vector<2x8xf32>
    %94 = vector.shape_cast %93 : vector<2x8xf32> to vector<2x8x1xf32>
    %95 = vector.broadcast %94 : vector<2x8x1xf32> to vector<2x8x8xf32>
    %96 = arith.subf %92, %95 : vector<2x8x8xf32>
    %97 = math.exp %96 : vector<2x8x8xf32>
    %cst_40 = arith.constant dense<0.000000e+00> : vector<2x8xf32>
    %98 = vector.multi_reduction <add>, %97, %cst_40 [2] : vector<2x8x8xf32> to vector<2x8xf32>
    %99 = vector.shape_cast %98 : vector<2x8xf32> to vector<2x8x1xf32>
    %100 = tpu.reciprocal %99 {approx = true} : vector<2x8x1xf32> -> vector<2x8x1xf32>
    %101 = vector.broadcast %100 : vector<2x8x1xf32> to vector<2x8x8xf32>
    %102 = arith.mulf %97, %101 : vector<2x8x8xf32>
    %103 = vector.shape_cast %88 : vector<16x32xf32> to vector<2x8x32xf32>
    "tpu.trace_start"() <{level = 10 : i32, message = "bqk,bkd->bqd"}> : () -> ()
    %cst_41 = arith.constant dense<0.000000e+00> : vector<2x8x32xf32>
    %104 = tpu.matmul %102, %103, %cst_41 {dimension_numbers = #tpu.dot_dimension_numbers<[2], [1], [1], [2], [0, 0, 0, 1, 1, 2], [0], [0]>} : vector<2x8x8xf32>, vector<2x8x32xf32>, vector<2x8x32xf32> -> vector<2x8x32xf32>
    "tpu.trace_stop"() : () -> ()
    %105 = vector.shape_cast %104 : vector<2x8x32xf32> to vector<16x32xf32>
    %106 = arith.addf %71, %105 : vector<16x32xf32>
    %c11 = arith.constant 11 : index
    %c0_42 = arith.constant 0 : index
    %c0_43 = arith.constant 0 : index
    %107 = vector.load %arg2[%c11, %c0_42, %c0_43] : memref<32x32x32xf32, #tpu.memory_space<vmem>>, vector<1x32x32xf32>
    %108 = vector.shape_cast %107 : vector<1x32x32xf32> to vector<32x32xf32>
    %c8 = arith.constant 8 : index
    %c0_44 = arith.constant 0 : index
    %c0_45 = arith.constant 0 : index
    %109 = vector.load %arg2[%c8, %c0_44, %c0_45] : memref<32x32x32xf32, #tpu.memory_space<vmem>>, vector<1x32x32xf32>
    %110 = vector.shape_cast %109 : vector<1x32x32xf32> to vector<32x32xf32>
    %cst_46 = arith.constant dense<0.000000e+00> : vector<16x32xf32>
    %111 = tpu.matmul %34, %110, %cst_46 {dimension_numbers = #tpu.dot_dimension_numbers<[1], [0], [0], [1], [0, 0, 1, 1], [], []>} : vector<16x32xf32>, vector<32x32xf32>, vector<16x32xf32> -> vector<16x32xf32>
    %112 = vector.extract_strided_slice %108 {offsets = [0, 0], sizes = [1, 32], strides = [1, 1]} : vector<32x32xf32> to vector<1x32xf32>
    %113 = vector.broadcast %112 : vector<1x32xf32> to vector<16x32xf32>
    %114 = arith.addf %111, %113 : vector<16x32xf32>
    %c9 = arith.constant 9 : index
    %c0_47 = arith.constant 0 : index
    %c0_48 = arith.constant 0 : index
    %115 = vector.load %arg2[%c9, %c0_47, %c0_48] : memref<32x32x32xf32, #tpu.memory_space<vmem>>, vector<1x32x32xf32>
    %116 = vector.shape_cast %115 : vector<1x32x32xf32> to vector<32x32xf32>
    %cst_49 = arith.constant dense<0.000000e+00> : vector<16x32xf32>
    %117 = tpu.matmul %34, %116, %cst_49 {dimension_numbers = #tpu.dot_dimension_numbers<[1], [0], [0], [1], [0, 0, 1, 1], [], []>} : vector<16x32xf32>, vector<32x32xf32>, vector<16x32xf32> -> vector<16x32xf32>
    %118 = vector.extract_strided_slice %108 {offsets = [1, 0], sizes = [1, 32], strides = [1, 1]} : vector<32x32xf32> to vector<1x32xf32>
    %119 = vector.broadcast %118 : vector<1x32xf32> to vector<16x32xf32>
    %120 = arith.addf %117, %119 : vector<16x32xf32>
    %c10 = arith.constant 10 : index
    %c0_50 = arith.constant 0 : index
    %c0_51 = arith.constant 0 : index
    %121 = vector.load %arg2[%c10, %c0_50, %c0_51] : memref<32x32x32xf32, #tpu.memory_space<vmem>>, vector<1x32x32xf32>
    %122 = vector.shape_cast %121 : vector<1x32x32xf32> to vector<32x32xf32>
    %cst_52 = arith.constant dense<0.000000e+00> : vector<16x32xf32>
    %123 = tpu.matmul %34, %122, %cst_52 {dimension_numbers = #tpu.dot_dimension_numbers<[1], [0], [0], [1], [0, 0, 1, 1], [], []>} : vector<16x32xf32>, vector<32x32xf32>, vector<16x32xf32> -> vector<16x32xf32>
    %124 = vector.shape_cast %114 : vector<16x32xf32> to vector<2x8x32xf32>
    %125 = vector.shape_cast %120 : vector<16x32xf32> to vector<2x8x32xf32>
    "tpu.trace_start"() <{level = 10 : i32, message = "bqd,bkd->bqk"}> : () -> ()
    %cst_53 = arith.constant dense<0.000000e+00> : vector<2x8x8xf32>
    %126 = tpu.matmul %124, %125, %cst_53 {dimension_numbers = #tpu.dot_dimension_numbers<[2], [2], [1], [1], [0, 0, 0, 1, 1, 1], [0], [0]>} : vector<2x8x32xf32>, vector<2x8x32xf32>, vector<2x8x8xf32> -> vector<2x8x8xf32>
    "tpu.trace_stop"() : () -> ()
    %127 = arith.addf %126, %3 : vector<2x8x8xf32>
    %cst_54 = arith.constant dense<0xFF800000> : vector<2x8xf32>
    %128 = vector.multi_reduction <maximumf>, %127, %cst_54 [2] : vector<2x8x8xf32> to vector<2x8xf32>
    %129 = vector.shape_cast %128 : vector<2x8xf32> to vector<2x8x1xf32>
    %130 = vector.broadcast %129 : vector<2x8x1xf32> to vector<2x8x8xf32>
    %131 = arith.subf %127, %130 : vector<2x8x8xf32>
    %132 = math.exp %131 : vector<2x8x8xf32>
    %cst_55 = arith.constant dense<0.000000e+00> : vector<2x8xf32>
    %133 = vector.multi_reduction <add>, %132, %cst_55 [2] : vector<2x8x8xf32> to vector<2x8xf32>
    %134 = vector.shape_cast %133 : vector<2x8xf32> to vector<2x8x1xf32>
    %135 = tpu.reciprocal %134 {approx = true} : vector<2x8x1xf32> -> vector<2x8x1xf32>
    %136 = vector.broadcast %135 : vector<2x8x1xf32> to vector<2x8x8xf32>
    %137 = arith.mulf %132, %136 : vector<2x8x8xf32>
    %138 = vector.shape_cast %123 : vector<16x32xf32> to vector<2x8x32xf32>
    "tpu.trace_start"() <{level = 10 : i32, message = "bqk,bkd->bqd"}> : () -> ()
    %cst_56 = arith.constant dense<0.000000e+00> : vector<2x8x32xf32>
    %139 = tpu.matmul %137, %138, %cst_56 {dimension_numbers = #tpu.dot_dimension_numbers<[2], [1], [1], [2], [0, 0, 0, 1, 1, 2], [0], [0]>} : vector<2x8x8xf32>, vector<2x8x32xf32>, vector<2x8x32xf32> -> vector<2x8x32xf32>
    "tpu.trace_stop"() : () -> ()
    %140 = vector.shape_cast %139 : vector<2x8x32xf32> to vector<16x32xf32>
    %141 = arith.addf %106, %140 : vector<16x32xf32>
    %c15 = arith.constant 15 : index
    %c0_57 = arith.constant 0 : index
    %c0_58 = arith.constant 0 : index
    %142 = vector.load %arg2[%c15, %c0_57, %c0_58] : memref<32x32x32xf32, #tpu.memory_space<vmem>>, vector<1x32x32xf32>
    %143 = vector.shape_cast %142 : vector<1x32x32xf32> to vector<32x32xf32>
    %c12 = arith.constant 12 : index
    %c0_59 = arith.constant 0 : index
    %c0_60 = arith.constant 0 : index
    %144 = vector.load %arg2[%c12, %c0_59, %c0_60] : memref<32x32x32xf32, #tpu.memory_space<vmem>>, vector<1x32x32xf32>
    %145 = vector.shape_cast %144 : vector<1x32x32xf32> to vector<32x32xf32>
    %cst_61 = arith.constant dense<0.000000e+00> : vector<16x32xf32>
    %146 = tpu.matmul %34, %145, %cst_61 {dimension_numbers = #tpu.dot_dimension_numbers<[1], [0], [0], [1], [0, 0, 1, 1], [], []>} : vector<16x32xf32>, vector<32x32xf32>, vector<16x32xf32> -> vector<16x32xf32>
    %147 = vector.extract_strided_slice %143 {offsets = [0, 0], sizes = [1, 32], strides = [1, 1]} : vector<32x32xf32> to vector<1x32xf32>
    %148 = vector.broadcast %147 : vector<1x32xf32> to vector<16x32xf32>
    %149 = arith.addf %146, %148 : vector<16x32xf32>
    %c13 = arith.constant 13 : index
    %c0_62 = arith.constant 0 : index
    %c0_63 = arith.constant 0 : index
    %150 = vector.load %arg2[%c13, %c0_62, %c0_63] : memref<32x32x32xf32, #tpu.memory_space<vmem>>, vector<1x32x32xf32>
    %151 = vector.shape_cast %150 : vector<1x32x32xf32> to vector<32x32xf32>
    %cst_64 = arith.constant dense<0.000000e+00> : vector<16x32xf32>
    %152 = tpu.matmul %34, %151, %cst_64 {dimension_numbers = #tpu.dot_dimension_numbers<[1], [0], [0], [1], [0, 0, 1, 1], [], []>} : vector<16x32xf32>, vector<32x32xf32>, vector<16x32xf32> -> vector<16x32xf32>
    %153 = vector.extract_strided_slice %143 {offsets = [1, 0], sizes = [1, 32], strides = [1, 1]} : vector<32x32xf32> to vector<1x32xf32>
    %154 = vector.broadcast %153 : vector<1x32xf32> to vector<16x32xf32>
    %155 = arith.addf %152, %154 : vector<16x32xf32>
    %c14 = arith.constant 14 : index
    %c0_65 = arith.constant 0 : index
    %c0_66 = arith.constant 0 : index
    %156 = vector.load %arg2[%c14, %c0_65, %c0_66] : memref<32x32x32xf32, #tpu.memory_space<vmem>>, vector<1x32x32xf32>
    %157 = vector.shape_cast %156 : vector<1x32x32xf32> to vector<32x32xf32>
    %cst_67 = arith.constant dense<0.000000e+00> : vector<16x32xf32>
    %158 = tpu.matmul %34, %157, %cst_67 {dimension_numbers = #tpu.dot_dimension_numbers<[1], [0], [0], [1], [0, 0, 1, 1], [], []>} : vector<16x32xf32>, vector<32x32xf32>, vector<16x32xf32> -> vector<16x32xf32>
    %159 = vector.shape_cast %149 : vector<16x32xf32> to vector<2x8x32xf32>
    %160 = vector.shape_cast %155 : vector<16x32xf32> to vector<2x8x32xf32>
    "tpu.trace_start"() <{level = 10 : i32, message = "bqd,bkd->bqk"}> : () -> ()
    %cst_68 = arith.constant dense<0.000000e+00> : vector<2x8x8xf32>
    %161 = tpu.matmul %159, %160, %cst_68 {dimension_numbers = #tpu.dot_dimension_numbers<[2], [2], [1], [1], [0, 0, 0, 1, 1, 1], [0], [0]>} : vector<2x8x32xf32>, vector<2x8x32xf32>, vector<2x8x8xf32> -> vector<2x8x8xf32>
    "tpu.trace_stop"() : () -> ()
    %162 = arith.addf %161, %3 : vector<2x8x8xf32>
    %cst_69 = arith.constant dense<0xFF800000> : vector<2x8xf32>
    %163 = vector.multi_reduction <maximumf>, %162, %cst_69 [2] : vector<2x8x8xf32> to vector<2x8xf32>
    %164 = vector.shape_cast %163 : vector<2x8xf32> to vector<2x8x1xf32>
    %165 = vector.broadcast %164 : vector<2x8x1xf32> to vector<2x8x8xf32>
    %166 = arith.subf %162, %165 : vector<2x8x8xf32>
    %167 = math.exp %166 : vector<2x8x8xf32>
    %cst_70 = arith.constant dense<0.000000e+00> : vector<2x8xf32>
    %168 = vector.multi_reduction <add>, %167, %cst_70 [2] : vector<2x8x8xf32> to vector<2x8xf32>
    %169 = vector.shape_cast %168 : vector<2x8xf32> to vector<2x8x1xf32>
    %170 = tpu.reciprocal %169 {approx = true} : vector<2x8x1xf32> -> vector<2x8x1xf32>
    %171 = vector.broadcast %170 : vector<2x8x1xf32> to vector<2x8x8xf32>
    %172 = arith.mulf %167, %171 : vector<2x8x8xf32>
    %173 = vector.shape_cast %158 : vector<16x32xf32> to vector<2x8x32xf32>
    "tpu.trace_start"() <{level = 10 : i32, message = "bqk,bkd->bqd"}> : () -> ()
    %cst_71 = arith.constant dense<0.000000e+00> : vector<2x8x32xf32>
    %174 = tpu.matmul %172, %173, %cst_71 {dimension_numbers = #tpu.dot_dimension_numbers<[2], [1], [1], [2], [0, 0, 0, 1, 1, 2], [0], [0]>} : vector<2x8x8xf32>, vector<2x8x32xf32>, vector<2x8x32xf32> -> vector<2x8x32xf32>
    "tpu.trace_stop"() : () -> ()
    %175 = vector.shape_cast %174 : vector<2x8x32xf32> to vector<16x32xf32>
    %176 = arith.addf %141, %175 : vector<16x32xf32>
    %cst_72 = arith.constant dense<0.000000e+00> : vector<16xf32>
    %177 = vector.multi_reduction <add>, %176, %cst_72 [1] : vector<16x32xf32> to vector<16xf32>
    %178 = vector.shape_cast %177 : vector<16xf32> to vector<16x1xf32>
    %cst_73 = arith.constant 3.200000e+01 : f32
    %179 = vector.broadcast %cst_73 : f32 to vector<16x1xf32>
    %180 = arith.divf %178, %179 : vector<16x1xf32>
    %181 = vector.broadcast %180 : vector<16x1xf32> to vector<16x32xf32>
    %182 = arith.subf %176, %181 : vector<16x32xf32>
    %183 = arith.mulf %182, %182 : vector<16x32xf32>
    %cst_74 = arith.constant dense<0.000000e+00> : vector<16xf32>
    %184 = vector.multi_reduction <add>, %183, %cst_74 [1] : vector<16x32xf32> to vector<16xf32>
    %185 = vector.shape_cast %184 : vector<16xf32> to vector<16x1xf32>
    %cst_75 = arith.constant 3.200000e+01 : f32
    %186 = vector.broadcast %cst_75 : f32 to vector<16x1xf32>
    %187 = arith.divf %185, %186 : vector<16x1xf32>
    %188 = vector.broadcast %180 : vector<16x1xf32> to vector<16x32xf32>
    %189 = arith.subf %176, %188 : vector<16x32xf32>
    %cst_76 = arith.constant 9.99999997E-7 : f32
    %190 = vector.broadcast %cst_76 : f32 to vector<16x1xf32>
    %191 = arith.addf %187, %190 : vector<16x1xf32>
    %192 = math.rsqrt %191 : vector<16x1xf32>
    %193 = vector.broadcast %192 : vector<16x1xf32> to vector<16x32xf32>
    %194 = arith.mulf %189, %193 : vector<16x32xf32>
    %195 = vector.broadcast %9 : vector<1x32xf32> to vector<16x32xf32>
    %196 = arith.mulf %194, %195 : vector<16x32xf32>
    %197 = vector.broadcast %10 : vector<1x32xf32> to vector<16x32xf32>
    %198 = arith.addf %196, %197 : vector<16x32xf32>
    %c0_77 = arith.constant 0 : index
    %c0_78 = arith.constant 0 : index
    %c0_79 = arith.constant 0 : index
    %199 = vector.load %arg3[%c0_77, %c0_78, %c0_79] : memref<2x32x64xf32, #tpu.memory_space<vmem>>, vector<1x32x64xf32>
    %200 = vector.shape_cast %199 : vector<1x32x64xf32> to vector<32x64xf32>
    %cst_80 = arith.constant dense<0.000000e+00> : vector<16x64xf32>
    %201 = tpu.matmul %198, %200, %cst_80 {dimension_numbers = #tpu.dot_dimension_numbers<[1], [0], [0], [1], [0, 0, 1, 1], [], []>} : vector<16x32xf32>, vector<32x64xf32>, vector<16x64xf32> -> vector<16x64xf32>
    %202 = vector.broadcast %11 : vector<1x64xf32> to vector<16x64xf32>
    %203 = arith.addf %201, %202 : vector<16x64xf32>
    %cst_81 = arith.constant 0.000000e+00 : f32
    %204 = vector.broadcast %cst_81 : f32 to vector<16x64xf32>
    %205 = arith.maximumf %203, %204 : vector<16x64xf32>
    %c0_82 = arith.constant 0 : index
    %c0_83 = arith.constant 0 : index
    %c0_84 = arith.constant 0 : index
    %206 = vector.load %arg4[%c0_82, %c0_83, %c0_84] : memref<2x64x32xf32, #tpu.memory_space<vmem>>, vector<1x64x32xf32>
    %207 = vector.shape_cast %206 : vector<1x64x32xf32> to vector<64x32xf32>
    %cst_85 = arith.constant dense<0.000000e+00> : vector<16x32xf32>
    %208 = tpu.matmul %205, %207, %cst_85 {dimension_numbers = #tpu.dot_dimension_numbers<[1], [0], [0], [1], [0, 0, 1, 1], [], []>} : vector<16x64xf32>, vector<64x32xf32>, vector<16x32xf32> -> vector<16x32xf32>
    %209 = vector.broadcast %12 : vector<1x32xf32> to vector<16x32xf32>
    %210 = arith.addf %208, %209 : vector<16x32xf32>
    %211 = arith.addf %210, %176 : vector<16x32xf32>
    %c1_86 = arith.constant 1 : index
    %c0_87 = arith.constant 0 : index
    %c0_88 = arith.constant 0 : index
    %212 = vector.load %arg5[%c1_86, %c0_87, %c0_88] : memref<3x8x128xf32, #tpu.memory_space<vmem>>, vector<1x8x128xf32>
    %213 = vector.shape_cast %212 : vector<1x8x128xf32> to vector<8x128xf32>
    %214 = vector.extract_strided_slice %213 {offsets = [0, 0], sizes = [1, 32], strides = [1, 1]} : vector<8x128xf32> to vector<1x32xf32>
    %215 = vector.extract_strided_slice %213 {offsets = [1, 0], sizes = [1, 32], strides = [1, 1]} : vector<8x128xf32> to vector<1x32xf32>
    %216 = vector.extract_strided_slice %213 {offsets = [2, 0], sizes = [1, 32], strides = [1, 1]} : vector<8x128xf32> to vector<1x32xf32>
    %217 = vector.extract_strided_slice %213 {offsets = [3, 0], sizes = [1, 32], strides = [1, 1]} : vector<8x128xf32> to vector<1x32xf32>
    %218 = vector.extract_strided_slice %213 {offsets = [4, 0], sizes = [1, 32], strides = [1, 1]} : vector<8x128xf32> to vector<1x32xf32>
    %219 = vector.extract_strided_slice %213 {offsets = [5, 0], sizes = [1, 64], strides = [1, 1]} : vector<8x128xf32> to vector<1x64xf32>
    %220 = vector.extract_strided_slice %213 {offsets = [6, 0], sizes = [1, 32], strides = [1, 1]} : vector<8x128xf32> to vector<1x32xf32>
    %cst_89 = arith.constant dense<0.000000e+00> : vector<16xf32>
    %221 = vector.multi_reduction <add>, %211, %cst_89 [1] : vector<16x32xf32> to vector<16xf32>
    %222 = vector.shape_cast %221 : vector<16xf32> to vector<16x1xf32>
    %cst_90 = arith.constant 3.200000e+01 : f32
    %223 = vector.broadcast %cst_90 : f32 to vector<16x1xf32>
    %224 = arith.divf %222, %223 : vector<16x1xf32>
    %225 = vector.broadcast %224 : vector<16x1xf32> to vector<16x32xf32>
    %226 = arith.subf %211, %225 : vector<16x32xf32>
    %227 = arith.mulf %226, %226 : vector<16x32xf32>
    %cst_91 = arith.constant dense<0.000000e+00> : vector<16xf32>
    %228 = vector.multi_reduction <add>, %227, %cst_91 [1] : vector<16x32xf32> to vector<16xf32>
    %229 = vector.shape_cast %228 : vector<16xf32> to vector<16x1xf32>
    %cst_92 = arith.constant 3.200000e+01 : f32
    %230 = vector.broadcast %cst_92 : f32 to vector<16x1xf32>
    %231 = arith.divf %229, %230 : vector<16x1xf32>
    %232 = vector.broadcast %224 : vector<16x1xf32> to vector<16x32xf32>
    %233 = arith.subf %211, %232 : vector<16x32xf32>
    %cst_93 = arith.constant 9.99999997E-7 : f32
    %234 = vector.broadcast %cst_93 : f32 to vector<16x1xf32>
    %235 = arith.addf %231, %234 : vector<16x1xf32>
    %236 = math.rsqrt %235 : vector<16x1xf32>
    %237 = vector.broadcast %236 : vector<16x1xf32> to vector<16x32xf32>
    %238 = arith.mulf %233, %237 : vector<16x32xf32>
    %239 = vector.broadcast %214 : vector<1x32xf32> to vector<16x32xf32>
    %240 = arith.mulf %238, %239 : vector<16x32xf32>
    %241 = vector.broadcast %215 : vector<1x32xf32> to vector<16x32xf32>
    %242 = arith.addf %240, %241 : vector<16x32xf32>
    %243 = vector.broadcast %216 : vector<1x32xf32> to vector<16x32xf32>
    %244 = arith.addf %211, %243 : vector<16x32xf32>
    %c19 = arith.constant 19 : index
    %c0_94 = arith.constant 0 : index
    %c0_95 = arith.constant 0 : index
    %245 = vector.load %arg2[%c19, %c0_94, %c0_95] : memref<32x32x32xf32, #tpu.memory_space<vmem>>, vector<1x32x32xf32>
    %246 = vector.shape_cast %245 : vector<1x32x32xf32> to vector<32x32xf32>
    %c16 = arith.constant 16 : index
    %c0_96 = arith.constant 0 : index
    %c0_97 = arith.constant 0 : index
    %247 = vector.load %arg2[%c16, %c0_96, %c0_97] : memref<32x32x32xf32, #tpu.memory_space<vmem>>, vector<1x32x32xf32>
    %248 = vector.shape_cast %247 : vector<1x32x32xf32> to vector<32x32xf32>
    %cst_98 = arith.constant dense<0.000000e+00> : vector<16x32xf32>
    %249 = tpu.matmul %242, %248, %cst_98 {dimension_numbers = #tpu.dot_dimension_numbers<[1], [0], [0], [1], [0, 0, 1, 1], [], []>} : vector<16x32xf32>, vector<32x32xf32>, vector<16x32xf32> -> vector<16x32xf32>
    %250 = vector.extract_strided_slice %246 {offsets = [0, 0], sizes = [1, 32], strides = [1, 1]} : vector<32x32xf32> to vector<1x32xf32>
    %251 = vector.broadcast %250 : vector<1x32xf32> to vector<16x32xf32>
    %252 = arith.addf %249, %251 : vector<16x32xf32>
    %c17 = arith.constant 17 : index
    %c0_99 = arith.constant 0 : index
    %c0_100 = arith.constant 0 : index
    %253 = vector.load %arg2[%c17, %c0_99, %c0_100] : memref<32x32x32xf32, #tpu.memory_space<vmem>>, vector<1x32x32xf32>
    %254 = vector.shape_cast %253 : vector<1x32x32xf32> to vector<32x32xf32>
    %cst_101 = arith.constant dense<0.000000e+00> : vector<16x32xf32>
    %255 = tpu.matmul %242, %254, %cst_101 {dimension_numbers = #tpu.dot_dimension_numbers<[1], [0], [0], [1], [0, 0, 1, 1], [], []>} : vector<16x32xf32>, vector<32x32xf32>, vector<16x32xf32> -> vector<16x32xf32>
    %256 = vector.extract_strided_slice %246 {offsets = [1, 0], sizes = [1, 32], strides = [1, 1]} : vector<32x32xf32> to vector<1x32xf32>
    %257 = vector.broadcast %256 : vector<1x32xf32> to vector<16x32xf32>
    %258 = arith.addf %255, %257 : vector<16x32xf32>
    %c18 = arith.constant 18 : index
    %c0_102 = arith.constant 0 : index
    %c0_103 = arith.constant 0 : index
    %259 = vector.load %arg2[%c18, %c0_102, %c0_103] : memref<32x32x32xf32, #tpu.memory_space<vmem>>, vector<1x32x32xf32>
    %260 = vector.shape_cast %259 : vector<1x32x32xf32> to vector<32x32xf32>
    %cst_104 = arith.constant dense<0.000000e+00> : vector<16x32xf32>
    %261 = tpu.matmul %242, %260, %cst_104 {dimension_numbers = #tpu.dot_dimension_numbers<[1], [0], [0], [1], [0, 0, 1, 1], [], []>} : vector<16x32xf32>, vector<32x32xf32>, vector<16x32xf32> -> vector<16x32xf32>
    %262 = vector.shape_cast %252 : vector<16x32xf32> to vector<2x8x32xf32>
    %263 = vector.shape_cast %258 : vector<16x32xf32> to vector<2x8x32xf32>
    "tpu.trace_start"() <{level = 10 : i32, message = "bqd,bkd->bqk"}> : () -> ()
    %cst_105 = arith.constant dense<0.000000e+00> : vector<2x8x8xf32>
    %264 = tpu.matmul %262, %263, %cst_105 {dimension_numbers = #tpu.dot_dimension_numbers<[2], [2], [1], [1], [0, 0, 0, 1, 1, 1], [0], [0]>} : vector<2x8x32xf32>, vector<2x8x32xf32>, vector<2x8x8xf32> -> vector<2x8x8xf32>
    "tpu.trace_stop"() : () -> ()
    %265 = arith.addf %264, %3 : vector<2x8x8xf32>
    %cst_106 = arith.constant dense<0xFF800000> : vector<2x8xf32>
    %266 = vector.multi_reduction <maximumf>, %265, %cst_106 [2] : vector<2x8x8xf32> to vector<2x8xf32>
    %267 = vector.shape_cast %266 : vector<2x8xf32> to vector<2x8x1xf32>
    %268 = vector.broadcast %267 : vector<2x8x1xf32> to vector<2x8x8xf32>
    %269 = arith.subf %265, %268 : vector<2x8x8xf32>
    %270 = math.exp %269 : vector<2x8x8xf32>
    %cst_107 = arith.constant dense<0.000000e+00> : vector<2x8xf32>
    %271 = vector.multi_reduction <add>, %270, %cst_107 [2] : vector<2x8x8xf32> to vector<2x8xf32>
    %272 = vector.shape_cast %271 : vector<2x8xf32> to vector<2x8x1xf32>
    %273 = tpu.reciprocal %272 {approx = true} : vector<2x8x1xf32> -> vector<2x8x1xf32>
    %274 = vector.broadcast %273 : vector<2x8x1xf32> to vector<2x8x8xf32>
    %275 = arith.mulf %270, %274 : vector<2x8x8xf32>
    %276 = vector.shape_cast %261 : vector<16x32xf32> to vector<2x8x32xf32>
    "tpu.trace_start"() <{level = 10 : i32, message = "bqk,bkd->bqd"}> : () -> ()
    %cst_108 = arith.constant dense<0.000000e+00> : vector<2x8x32xf32>
    %277 = tpu.matmul %275, %276, %cst_108 {dimension_numbers = #tpu.dot_dimension_numbers<[2], [1], [1], [2], [0, 0, 0, 1, 1, 2], [0], [0]>} : vector<2x8x8xf32>, vector<2x8x32xf32>, vector<2x8x32xf32> -> vector<2x8x32xf32>
    "tpu.trace_stop"() : () -> ()
    %278 = vector.shape_cast %277 : vector<2x8x32xf32> to vector<16x32xf32>
    %279 = arith.addf %244, %278 : vector<16x32xf32>
    %c23 = arith.constant 23 : index
    %c0_109 = arith.constant 0 : index
    %c0_110 = arith.constant 0 : index
    %280 = vector.load %arg2[%c23, %c0_109, %c0_110] : memref<32x32x32xf32, #tpu.memory_space<vmem>>, vector<1x32x32xf32>
    %281 = vector.shape_cast %280 : vector<1x32x32xf32> to vector<32x32xf32>
    %c20 = arith.constant 20 : index
    %c0_111 = arith.constant 0 : index
    %c0_112 = arith.constant 0 : index
    %282 = vector.load %arg2[%c20, %c0_111, %c0_112] : memref<32x32x32xf32, #tpu.memory_space<vmem>>, vector<1x32x32xf32>
    %283 = vector.shape_cast %282 : vector<1x32x32xf32> to vector<32x32xf32>
    %cst_113 = arith.constant dense<0.000000e+00> : vector<16x32xf32>
    %284 = tpu.matmul %242, %283, %cst_113 {dimension_numbers = #tpu.dot_dimension_numbers<[1], [0], [0], [1], [0, 0, 1, 1], [], []>} : vector<16x32xf32>, vector<32x32xf32>, vector<16x32xf32> -> vector<16x32xf32>
    %285 = vector.extract_strided_slice %281 {offsets = [0, 0], sizes = [1, 32], strides = [1, 1]} : vector<32x32xf32> to vector<1x32xf32>
    %286 = vector.broadcast %285 : vector<1x32xf32> to vector<16x32xf32>
    %287 = arith.addf %284, %286 : vector<16x32xf32>
    %c21 = arith.constant 21 : index
    %c0_114 = arith.constant 0 : index
    %c0_115 = arith.constant 0 : index
    %288 = vector.load %arg2[%c21, %c0_114, %c0_115] : memref<32x32x32xf32, #tpu.memory_space<vmem>>, vector<1x32x32xf32>
    %289 = vector.shape_cast %288 : vector<1x32x32xf32> to vector<32x32xf32>
    %cst_116 = arith.constant dense<0.000000e+00> : vector<16x32xf32>
    %290 = tpu.matmul %242, %289, %cst_116 {dimension_numbers = #tpu.dot_dimension_numbers<[1], [0], [0], [1], [0, 0, 1, 1], [], []>} : vector<16x32xf32>, vector<32x32xf32>, vector<16x32xf32> -> vector<16x32xf32>
    %291 = vector.extract_strided_slice %281 {offsets = [1, 0], sizes = [1, 32], strides = [1, 1]} : vector<32x32xf32> to vector<1x32xf32>
    %292 = vector.broadcast %291 : vector<1x32xf32> to vector<16x32xf32>
    %293 = arith.addf %290, %292 : vector<16x32xf32>
    %c22 = arith.constant 22 : index
    %c0_117 = arith.constant 0 : index
    %c0_118 = arith.constant 0 : index
    %294 = vector.load %arg2[%c22, %c0_117, %c0_118] : memref<32x32x32xf32, #tpu.memory_space<vmem>>, vector<1x32x32xf32>
    %295 = vector.shape_cast %294 : vector<1x32x32xf32> to vector<32x32xf32>
    %cst_119 = arith.constant dense<0.000000e+00> : vector<16x32xf32>
    %296 = tpu.matmul %242, %295, %cst_119 {dimension_numbers = #tpu.dot_dimension_numbers<[1], [0], [0], [1], [0, 0, 1, 1], [], []>} : vector<16x32xf32>, vector<32x32xf32>, vector<16x32xf32> -> vector<16x32xf32>
    %297 = vector.shape_cast %287 : vector<16x32xf32> to vector<2x8x32xf32>
    %298 = vector.shape_cast %293 : vector<16x32xf32> to vector<2x8x32xf32>
    "tpu.trace_start"() <{level = 10 : i32, message = "bqd,bkd->bqk"}> : () -> ()
    %cst_120 = arith.constant dense<0.000000e+00> : vector<2x8x8xf32>
    %299 = tpu.matmul %297, %298, %cst_120 {dimension_numbers = #tpu.dot_dimension_numbers<[2], [2], [1], [1], [0, 0, 0, 1, 1, 1], [0], [0]>} : vector<2x8x32xf32>, vector<2x8x32xf32>, vector<2x8x8xf32> -> vector<2x8x8xf32>
    "tpu.trace_stop"() : () -> ()
    %300 = arith.addf %299, %3 : vector<2x8x8xf32>
    %cst_121 = arith.constant dense<0xFF800000> : vector<2x8xf32>
    %301 = vector.multi_reduction <maximumf>, %300, %cst_121 [2] : vector<2x8x8xf32> to vector<2x8xf32>
    %302 = vector.shape_cast %301 : vector<2x8xf32> to vector<2x8x1xf32>
    %303 = vector.broadcast %302 : vector<2x8x1xf32> to vector<2x8x8xf32>
    %304 = arith.subf %300, %303 : vector<2x8x8xf32>
    %305 = math.exp %304 : vector<2x8x8xf32>
    %cst_122 = arith.constant dense<0.000000e+00> : vector<2x8xf32>
    %306 = vector.multi_reduction <add>, %305, %cst_122 [2] : vector<2x8x8xf32> to vector<2x8xf32>
    %307 = vector.shape_cast %306 : vector<2x8xf32> to vector<2x8x1xf32>
    %308 = tpu.reciprocal %307 {approx = true} : vector<2x8x1xf32> -> vector<2x8x1xf32>
    %309 = vector.broadcast %308 : vector<2x8x1xf32> to vector<2x8x8xf32>
    %310 = arith.mulf %305, %309 : vector<2x8x8xf32>
    %311 = vector.shape_cast %296 : vector<16x32xf32> to vector<2x8x32xf32>
    "tpu.trace_start"() <{level = 10 : i32, message = "bqk,bkd->bqd"}> : () -> ()
    %cst_123 = arith.constant dense<0.000000e+00> : vector<2x8x32xf32>
    %312 = tpu.matmul %310, %311, %cst_123 {dimension_numbers = #tpu.dot_dimension_numbers<[2], [1], [1], [2], [0, 0, 0, 1, 1, 2], [0], [0]>} : vector<2x8x8xf32>, vector<2x8x32xf32>, vector<2x8x32xf32> -> vector<2x8x32xf32>
    "tpu.trace_stop"() : () -> ()
    %313 = vector.shape_cast %312 : vector<2x8x32xf32> to vector<16x32xf32>
    %314 = arith.addf %279, %313 : vector<16x32xf32>
    %c27 = arith.constant 27 : index
    %c0_124 = arith.constant 0 : index
    %c0_125 = arith.constant 0 : index
    %315 = vector.load %arg2[%c27, %c0_124, %c0_125] : memref<32x32x32xf32, #tpu.memory_space<vmem>>, vector<1x32x32xf32>
    %316 = vector.shape_cast %315 : vector<1x32x32xf32> to vector<32x32xf32>
    %c24 = arith.constant 24 : index
    %c0_126 = arith.constant 0 : index
    %c0_127 = arith.constant 0 : index
    %317 = vector.load %arg2[%c24, %c0_126, %c0_127] : memref<32x32x32xf32, #tpu.memory_space<vmem>>, vector<1x32x32xf32>
    %318 = vector.shape_cast %317 : vector<1x32x32xf32> to vector<32x32xf32>
    %cst_128 = arith.constant dense<0.000000e+00> : vector<16x32xf32>
    %319 = tpu.matmul %242, %318, %cst_128 {dimension_numbers = #tpu.dot_dimension_numbers<[1], [0], [0], [1], [0, 0, 1, 1], [], []>} : vector<16x32xf32>, vector<32x32xf32>, vector<16x32xf32> -> vector<16x32xf32>
    %320 = vector.extract_strided_slice %316 {offsets = [0, 0], sizes = [1, 32], strides = [1, 1]} : vector<32x32xf32> to vector<1x32xf32>
    %321 = vector.broadcast %320 : vector<1x32xf32> to vector<16x32xf32>
    %322 = arith.addf %319, %321 : vector<16x32xf32>
    %c25 = arith.constant 25 : index
    %c0_129 = arith.constant 0 : index
    %c0_130 = arith.constant 0 : index
    %323 = vector.load %arg2[%c25, %c0_129, %c0_130] : memref<32x32x32xf32, #tpu.memory_space<vmem>>, vector<1x32x32xf32>
    %324 = vector.shape_cast %323 : vector<1x32x32xf32> to vector<32x32xf32>
    %cst_131 = arith.constant dense<0.000000e+00> : vector<16x32xf32>
    %325 = tpu.matmul %242, %324, %cst_131 {dimension_numbers = #tpu.dot_dimension_numbers<[1], [0], [0], [1], [0, 0, 1, 1], [], []>} : vector<16x32xf32>, vector<32x32xf32>, vector<16x32xf32> -> vector<16x32xf32>
    %326 = vector.extract_strided_slice %316 {offsets = [1, 0], sizes = [1, 32], strides = [1, 1]} : vector<32x32xf32> to vector<1x32xf32>
    %327 = vector.broadcast %326 : vector<1x32xf32> to vector<16x32xf32>
    %328 = arith.addf %325, %327 : vector<16x32xf32>
    %c26 = arith.constant 26 : index
    %c0_132 = arith.constant 0 : index
    %c0_133 = arith.constant 0 : index
    %329 = vector.load %arg2[%c26, %c0_132, %c0_133] : memref<32x32x32xf32, #tpu.memory_space<vmem>>, vector<1x32x32xf32>
    %330 = vector.shape_cast %329 : vector<1x32x32xf32> to vector<32x32xf32>
    %cst_134 = arith.constant dense<0.000000e+00> : vector<16x32xf32>
    %331 = tpu.matmul %242, %330, %cst_134 {dimension_numbers = #tpu.dot_dimension_numbers<[1], [0], [0], [1], [0, 0, 1, 1], [], []>} : vector<16x32xf32>, vector<32x32xf32>, vector<16x32xf32> -> vector<16x32xf32>
    %332 = vector.shape_cast %322 : vector<16x32xf32> to vector<2x8x32xf32>
    %333 = vector.shape_cast %328 : vector<16x32xf32> to vector<2x8x32xf32>
    "tpu.trace_start"() <{level = 10 : i32, message = "bqd,bkd->bqk"}> : () -> ()
    %cst_135 = arith.constant dense<0.000000e+00> : vector<2x8x8xf32>
    %334 = tpu.matmul %332, %333, %cst_135 {dimension_numbers = #tpu.dot_dimension_numbers<[2], [2], [1], [1], [0, 0, 0, 1, 1, 1], [0], [0]>} : vector<2x8x32xf32>, vector<2x8x32xf32>, vector<2x8x8xf32> -> vector<2x8x8xf32>
    "tpu.trace_stop"() : () -> ()
    %335 = arith.addf %334, %3 : vector<2x8x8xf32>
    %cst_136 = arith.constant dense<0xFF800000> : vector<2x8xf32>
    %336 = vector.multi_reduction <maximumf>, %335, %cst_136 [2] : vector<2x8x8xf32> to vector<2x8xf32>
    %337 = vector.shape_cast %336 : vector<2x8xf32> to vector<2x8x1xf32>
    %338 = vector.broadcast %337 : vector<2x8x1xf32> to vector<2x8x8xf32>
    %339 = arith.subf %335, %338 : vector<2x8x8xf32>
    %340 = math.exp %339 : vector<2x8x8xf32>
    %cst_137 = arith.constant dense<0.000000e+00> : vector<2x8xf32>
    %341 = vector.multi_reduction <add>, %340, %cst_137 [2] : vector<2x8x8xf32> to vector<2x8xf32>
    %342 = vector.shape_cast %341 : vector<2x8xf32> to vector<2x8x1xf32>
    %343 = tpu.reciprocal %342 {approx = true} : vector<2x8x1xf32> -> vector<2x8x1xf32>
    %344 = vector.broadcast %343 : vector<2x8x1xf32> to vector<2x8x8xf32>
    %345 = arith.mulf %340, %344 : vector<2x8x8xf32>
    %346 = vector.shape_cast %331 : vector<16x32xf32> to vector<2x8x32xf32>
    "tpu.trace_start"() <{level = 10 : i32, message = "bqk,bkd->bqd"}> : () -> ()
    %cst_138 = arith.constant dense<0.000000e+00> : vector<2x8x32xf32>
    %347 = tpu.matmul %345, %346, %cst_138 {dimension_numbers = #tpu.dot_dimension_numbers<[2], [1], [1], [2], [0, 0, 0, 1, 1, 2], [0], [0]>} : vector<2x8x8xf32>, vector<2x8x32xf32>, vector<2x8x32xf32> -> vector<2x8x32xf32>
    "tpu.trace_stop"() : () -> ()
    %348 = vector.shape_cast %347 : vector<2x8x32xf32> to vector<16x32xf32>
    %349 = arith.addf %314, %348 : vector<16x32xf32>
    %c31 = arith.constant 31 : index
    %c0_139 = arith.constant 0 : index
    %c0_140 = arith.constant 0 : index
    %350 = vector.load %arg2[%c31, %c0_139, %c0_140] : memref<32x32x32xf32, #tpu.memory_space<vmem>>, vector<1x32x32xf32>
    %351 = vector.shape_cast %350 : vector<1x32x32xf32> to vector<32x32xf32>
    %c28 = arith.constant 28 : index
    %c0_141 = arith.constant 0 : index
    %c0_142 = arith.constant 0 : index
    %352 = vector.load %arg2[%c28, %c0_141, %c0_142] : memref<32x32x32xf32, #tpu.memory_space<vmem>>, vector<1x32x32xf32>
    %353 = vector.shape_cast %352 : vector<1x32x32xf32> to vector<32x32xf32>
    %cst_143 = arith.constant dense<0.000000e+00> : vector<16x32xf32>
    %354 = tpu.matmul %242, %353, %cst_143 {dimension_numbers = #tpu.dot_dimension_numbers<[1], [0], [0], [1], [0, 0, 1, 1], [], []>} : vector<16x32xf32>, vector<32x32xf32>, vector<16x32xf32> -> vector<16x32xf32>
    %355 = vector.extract_strided_slice %351 {offsets = [0, 0], sizes = [1, 32], strides = [1, 1]} : vector<32x32xf32> to vector<1x32xf32>
    %356 = vector.broadcast %355 : vector<1x32xf32> to vector<16x32xf32>
    %357 = arith.addf %354, %356 : vector<16x32xf32>
    %c29 = arith.constant 29 : index
    %c0_144 = arith.constant 0 : index
    %c0_145 = arith.constant 0 : index
    %358 = vector.load %arg2[%c29, %c0_144, %c0_145] : memref<32x32x32xf32, #tpu.memory_space<vmem>>, vector<1x32x32xf32>
    %359 = vector.shape_cast %358 : vector<1x32x32xf32> to vector<32x32xf32>
    %cst_146 = arith.constant dense<0.000000e+00> : vector<16x32xf32>
    %360 = tpu.matmul %242, %359, %cst_146 {dimension_numbers = #tpu.dot_dimension_numbers<[1], [0], [0], [1], [0, 0, 1, 1], [], []>} : vector<16x32xf32>, vector<32x32xf32>, vector<16x32xf32> -> vector<16x32xf32>
    %361 = vector.extract_strided_slice %351 {offsets = [1, 0], sizes = [1, 32], strides = [1, 1]} : vector<32x32xf32> to vector<1x32xf32>
    %362 = vector.broadcast %361 : vector<1x32xf32> to vector<16x32xf32>
    %363 = arith.addf %360, %362 : vector<16x32xf32>
    %c30 = arith.constant 30 : index
    %c0_147 = arith.constant 0 : index
    %c0_148 = arith.constant 0 : index
    %364 = vector.load %arg2[%c30, %c0_147, %c0_148] : memref<32x32x32xf32, #tpu.memory_space<vmem>>, vector<1x32x32xf32>
    %365 = vector.shape_cast %364 : vector<1x32x32xf32> to vector<32x32xf32>
    %cst_149 = arith.constant dense<0.000000e+00> : vector<16x32xf32>
    %366 = tpu.matmul %242, %365, %cst_149 {dimension_numbers = #tpu.dot_dimension_numbers<[1], [0], [0], [1], [0, 0, 1, 1], [], []>} : vector<16x32xf32>, vector<32x32xf32>, vector<16x32xf32> -> vector<16x32xf32>
    %367 = vector.shape_cast %357 : vector<16x32xf32> to vector<2x8x32xf32>
    %368 = vector.shape_cast %363 : vector<16x32xf32> to vector<2x8x32xf32>
    "tpu.trace_start"() <{level = 10 : i32, message = "bqd,bkd->bqk"}> : () -> ()
    %cst_150 = arith.constant dense<0.000000e+00> : vector<2x8x8xf32>
    %369 = tpu.matmul %367, %368, %cst_150 {dimension_numbers = #tpu.dot_dimension_numbers<[2], [2], [1], [1], [0, 0, 0, 1, 1, 1], [0], [0]>} : vector<2x8x32xf32>, vector<2x8x32xf32>, vector<2x8x8xf32> -> vector<2x8x8xf32>
    "tpu.trace_stop"() : () -> ()
    %370 = arith.addf %369, %3 : vector<2x8x8xf32>
    %cst_151 = arith.constant dense<0xFF800000> : vector<2x8xf32>
    %371 = vector.multi_reduction <maximumf>, %370, %cst_151 [2] : vector<2x8x8xf32> to vector<2x8xf32>
    %372 = vector.shape_cast %371 : vector<2x8xf32> to vector<2x8x1xf32>
    %373 = vector.broadcast %372 : vector<2x8x1xf32> to vector<2x8x8xf32>
    %374 = arith.subf %370, %373 : vector<2x8x8xf32>
    %375 = math.exp %374 : vector<2x8x8xf32>
    %cst_152 = arith.constant dense<0.000000e+00> : vector<2x8xf32>
    %376 = vector.multi_reduction <add>, %375, %cst_152 [2] : vector<2x8x8xf32> to vector<2x8xf32>
    %377 = vector.shape_cast %376 : vector<2x8xf32> to vector<2x8x1xf32>
    %378 = tpu.reciprocal %377 {approx = true} : vector<2x8x1xf32> -> vector<2x8x1xf32>
    %379 = vector.broadcast %378 : vector<2x8x1xf32> to vector<2x8x8xf32>
    %380 = arith.mulf %375, %379 : vector<2x8x8xf32>
    %381 = vector.shape_cast %366 : vector<16x32xf32> to vector<2x8x32xf32>
    "tpu.trace_start"() <{level = 10 : i32, message = "bqk,bkd->bqd"}> : () -> ()
    %cst_153 = arith.constant dense<0.000000e+00> : vector<2x8x32xf32>
    %382 = tpu.matmul %380, %381, %cst_153 {dimension_numbers = #tpu.dot_dimension_numbers<[2], [1], [1], [2], [0, 0, 0, 1, 1, 2], [0], [0]>} : vector<2x8x8xf32>, vector<2x8x32xf32>, vector<2x8x32xf32> -> vector<2x8x32xf32>
    "tpu.trace_stop"() : () -> ()
    %383 = vector.shape_cast %382 : vector<2x8x32xf32> to vector<16x32xf32>
    %384 = arith.addf %349, %383 : vector<16x32xf32>
    %cst_154 = arith.constant dense<0.000000e+00> : vector<16xf32>
    %385 = vector.multi_reduction <add>, %384, %cst_154 [1] : vector<16x32xf32> to vector<16xf32>
    %386 = vector.shape_cast %385 : vector<16xf32> to vector<16x1xf32>
    %cst_155 = arith.constant 3.200000e+01 : f32
    %387 = vector.broadcast %cst_155 : f32 to vector<16x1xf32>
    %388 = arith.divf %386, %387 : vector<16x1xf32>
    %389 = vector.broadcast %388 : vector<16x1xf32> to vector<16x32xf32>
    %390 = arith.subf %384, %389 : vector<16x32xf32>
    %391 = arith.mulf %390, %390 : vector<16x32xf32>
    %cst_156 = arith.constant dense<0.000000e+00> : vector<16xf32>
    %392 = vector.multi_reduction <add>, %391, %cst_156 [1] : vector<16x32xf32> to vector<16xf32>
    %393 = vector.shape_cast %392 : vector<16xf32> to vector<16x1xf32>
    %cst_157 = arith.constant 3.200000e+01 : f32
    %394 = vector.broadcast %cst_157 : f32 to vector<16x1xf32>
    %395 = arith.divf %393, %394 : vector<16x1xf32>
    %396 = vector.broadcast %388 : vector<16x1xf32> to vector<16x32xf32>
    %397 = arith.subf %384, %396 : vector<16x32xf32>
    %cst_158 = arith.constant 9.99999997E-7 : f32
    %398 = vector.broadcast %cst_158 : f32 to vector<16x1xf32>
    %399 = arith.addf %395, %398 : vector<16x1xf32>
    %400 = math.rsqrt %399 : vector<16x1xf32>
    %401 = vector.broadcast %400 : vector<16x1xf32> to vector<16x32xf32>
    %402 = arith.mulf %397, %401 : vector<16x32xf32>
    %403 = vector.broadcast %217 : vector<1x32xf32> to vector<16x32xf32>
    %404 = arith.mulf %402, %403 : vector<16x32xf32>
    %405 = vector.broadcast %218 : vector<1x32xf32> to vector<16x32xf32>
    %406 = arith.addf %404, %405 : vector<16x32xf32>
    %c1_159 = arith.constant 1 : index
    %c0_160 = arith.constant 0 : index
    %c0_161 = arith.constant 0 : index
    %407 = vector.load %arg3[%c1_159, %c0_160, %c0_161] : memref<2x32x64xf32, #tpu.memory_space<vmem>>, vector<1x32x64xf32>
    %408 = vector.shape_cast %407 : vector<1x32x64xf32> to vector<32x64xf32>
    %cst_162 = arith.constant dense<0.000000e+00> : vector<16x64xf32>
    %409 = tpu.matmul %406, %408, %cst_162 {dimension_numbers = #tpu.dot_dimension_numbers<[1], [0], [0], [1], [0, 0, 1, 1], [], []>} : vector<16x32xf32>, vector<32x64xf32>, vector<16x64xf32> -> vector<16x64xf32>
    %410 = vector.broadcast %219 : vector<1x64xf32> to vector<16x64xf32>
    %411 = arith.addf %409, %410 : vector<16x64xf32>
    %cst_163 = arith.constant 0.000000e+00 : f32
    %412 = vector.broadcast %cst_163 : f32 to vector<16x64xf32>
    %413 = arith.maximumf %411, %412 : vector<16x64xf32>
    %c1_164 = arith.constant 1 : index
    %c0_165 = arith.constant 0 : index
    %c0_166 = arith.constant 0 : index
    %414 = vector.load %arg4[%c1_164, %c0_165, %c0_166] : memref<2x64x32xf32, #tpu.memory_space<vmem>>, vector<1x64x32xf32>
    %415 = vector.shape_cast %414 : vector<1x64x32xf32> to vector<64x32xf32>
    %cst_167 = arith.constant dense<0.000000e+00> : vector<16x32xf32>
    %416 = tpu.matmul %413, %415, %cst_167 {dimension_numbers = #tpu.dot_dimension_numbers<[1], [0], [0], [1], [0, 0, 1, 1], [], []>} : vector<16x64xf32>, vector<64x32xf32>, vector<16x32xf32> -> vector<16x32xf32>
    %417 = vector.broadcast %220 : vector<1x32xf32> to vector<16x32xf32>
    %418 = arith.addf %416, %417 : vector<16x32xf32>
    %419 = arith.addf %418, %384 : vector<16x32xf32>
    %c2_168 = arith.constant 2 : index
    %c0_169 = arith.constant 0 : index
    %c0_170 = arith.constant 0 : index
    %420 = vector.load %arg5[%c2_168, %c0_169, %c0_170] : memref<3x8x128xf32, #tpu.memory_space<vmem>>, vector<1x8x128xf32>
    %421 = vector.shape_cast %420 : vector<1x8x128xf32> to vector<8x128xf32>
    %422 = vector.extract_strided_slice %421 {offsets = [0, 0], sizes = [1, 32], strides = [1, 1]} : vector<8x128xf32> to vector<1x32xf32>
    %423 = vector.extract_strided_slice %421 {offsets = [1, 0], sizes = [1, 32], strides = [1, 1]} : vector<8x128xf32> to vector<1x32xf32>
    %cst_171 = arith.constant dense<0.000000e+00> : vector<16xf32>
    %424 = vector.multi_reduction <add>, %419, %cst_171 [1] : vector<16x32xf32> to vector<16xf32>
    %425 = vector.shape_cast %424 : vector<16xf32> to vector<16x1xf32>
    %cst_172 = arith.constant 3.200000e+01 : f32
    %426 = vector.broadcast %cst_172 : f32 to vector<16x1xf32>
    %427 = arith.divf %425, %426 : vector<16x1xf32>
    %428 = vector.broadcast %427 : vector<16x1xf32> to vector<16x32xf32>
    %429 = arith.subf %419, %428 : vector<16x32xf32>
    %430 = arith.mulf %429, %429 : vector<16x32xf32>
    %cst_173 = arith.constant dense<0.000000e+00> : vector<16xf32>
    %431 = vector.multi_reduction <add>, %430, %cst_173 [1] : vector<16x32xf32> to vector<16xf32>
    %432 = vector.shape_cast %431 : vector<16xf32> to vector<16x1xf32>
    %cst_174 = arith.constant 3.200000e+01 : f32
    %433 = vector.broadcast %cst_174 : f32 to vector<16x1xf32>
    %434 = arith.divf %432, %433 : vector<16x1xf32>
    %435 = vector.broadcast %427 : vector<16x1xf32> to vector<16x32xf32>
    %436 = arith.subf %419, %435 : vector<16x32xf32>
    %cst_175 = arith.constant 9.99999997E-7 : f32
    %437 = vector.broadcast %cst_175 : f32 to vector<16x1xf32>
    %438 = arith.addf %434, %437 : vector<16x1xf32>
    %439 = math.rsqrt %438 : vector<16x1xf32>
    %440 = vector.broadcast %439 : vector<16x1xf32> to vector<16x32xf32>
    %441 = arith.mulf %436, %440 : vector<16x32xf32>
    %442 = vector.broadcast %422 : vector<1x32xf32> to vector<16x32xf32>
    %443 = arith.mulf %441, %442 : vector<16x32xf32>
    %444 = vector.broadcast %423 : vector<1x32xf32> to vector<16x32xf32>
    %445 = arith.addf %443, %444 : vector<16x32xf32>
    %c0_176 = arith.constant 0 : index
    %c0_177 = arith.constant 0 : index
    %446 = vector.load %arg6[%c0_176, %c0_177] : memref<16x32xf32, #tpu.memory_space<vmem>>, vector<16x32xf32>
    tpu.vector_store %arg6[%c0_176, %c0_177], %445 {strides = array<i32>} : memref<16x32xf32, #tpu.memory_space<vmem>>, vector<16x32xf32>,
    return
  }
}

</mosaic_0001>

<bundles_post_ra>
// kernel: transformer_encoder_forward.1
= control target key start
LH: loop header
LB: loop body
LE: loop exit
PB: predicated region body
PF: predicated region fallthrough
CT: control target
= control target key end

     0   :  { %11 = vsyncpa [#allocation3], 0  ;;  %s6190_s21 = smov [#allocation2]   ;;  %s6823_s0 = inlined_call_operand.vmem [shape: f32[16,32], index: 0, kind: input, shape index: {}]   ;;  %s6824_s1 = inlined_call_operand.vmem [shape: f32[2,1,8], index: 1, kind: input, shape index: {}]   ;;  %s6825_s2 = inlined_call_operand.hbm [shape: f32[32,32,32], index: 2, kind: input, shape index: {}]   ;;  %s6826_s3 = inlined_call_operand.vmem [shape: f32[2,32,64], index: 3, kind: input, shape index: {}]   ;;  %s6827_s4 = inlined_call_operand.vmem [shape: f32[2,64,32], index: 4, kind: input, shape index: {}]   ;;  %s6828_s5 = inlined_call_operand.vmem [shape: f32[3,8,128], index: 5, kind: input, shape index: {}]   ;;  %s6829_s6 = inlined_call_operand.vmem [shape: f32[16,32], index: 6, kind: output, shape index: {}]  }
   0x1   :  { %s21_s22 = sshll.u32 %s6190_s21, 4  ;;  %s22_s22 = int_to_ptr.vmem [resolvable:$true] %s21_s22 }
   0x2   :  { %s6176_s23 = scalar_lea.vmem %s22_s22, 16384  ;;  %p6181_p1 = scmp.lt.s32.totalorder %s22_s22, %s22_s22 }
   0x3   :  { %p6177_p0 = scmp.ne.s32.totalorder %s22_s22, %s6176_s23  ;;  %p6182_p2 = scmp.lt.s32.totalorder %s6176_s23, %s6176_s23 }
   0x5   :  { %p6183_p3 = por %p6182_p2, %p6181_p1 }
   0x7   :  { %p6184_p4 = pnand %p6183_p3, %p6177_p0 }
   0x9   :  { %6187 = shalt.err (!%p6184_p4)
}
   0xa   :  { %s6191_s24 = smov 128   ;;  %s6192_s25 = smov 8  }
   0xb   :  { %27 = dma.hbm_to_vmem [thread:$0]  %s6825_s2, 16384, %s22_s22, [#allocation3], %s6191_s24, %s6191_s24, %s6192_s25  }
   0xc   :  { %6188 = dma.done.wait [#allocation3], 16384  }
   0xd   :  { %6189 = vsyncadd [#allocation3], 4294950912  ;;  %vm54_vm0 = vcmask 261120   ;;  %v6236_v0 = vld [vmem:[%s6823_s0] sm:$0xff]  ;;  %v6241_v1 = vld [vmem:[%s6823_s0 + $0x8] sm:$0xff]  ;;  %v82_v27 = vlaneseq  ;;  %v6193_v47 = vmov 0.0  }
   0xe   :  { %v55_v2 = vsel %vm54_vm0, %v6236_v0, 0.0  ;;  %v58_v3 = vsel %vm54_vm0, %v6241_v1, 0.0  ;;  %v105_v14 = vld [vmem:[#allocation2 + $0x18] sm:$0xff]  ;;  %v104_v16 = vld [vmem:[#allocation2 + $0x10] sm:$0xff]  ;;  %v103_v18 = vld [vmem:[#allocation2 + $0x8] sm:$0xff]  ;;  %vm6194_vm1 = vmmov 0  }
   0xf   :  { %56 = vadd.xlane.f32.xlu0 %v55_v2  ;;  %5592 = vmatprep.subr.mxu0 %v105_v14  ;;  %v195_v15 = vld [vmem:[#allocation2 + $0x38] sm:$0xff]  ;;  %v194_v17 = vld [vmem:[#allocation2 + $0x30] sm:$0xff]  ;;  %v193_v19 = vld [vmem:[#allocation2 + $0x28] sm:$0xff]  ;;  %v6251_v30 = vshrl.u32 %v82_v27, 7  ;;  %vm507_vm2 = vcmask 64512   ;;  %vm2535_vm3 = vcmask 523264  }
  0x10   :  { %5593 = vmatpush3.msra.mxu0 %v105_v14  ;;  %5603 = vmatprep.subr.mxu1 %v195_v15  ;;  %v102_v20 = vld [vmem:[#allocation2] sm:$0xff]  ;;  %v279_v22 = vld [vmem:[#allocation2 + $0x58] sm:$0xff]  ;;  %v278_v44 = vld [vmem:[#allocation2 + $0x50] sm:$0xff] }
  0x11   :  { %5594 = vmatprep.subr.mxu0 %v104_v16  ;;  %5604 = vmatpush3.msra.mxu1 %v195_v15  ;;  %v192_v21 = vld [vmem:[#allocation2 + $0x20] sm:$0xff]  ;;  %v6254_v31 = vsub.s32 0, %v6251_v30  ;;  %v6262_v33 = vsub.s32 1, %v6251_v30  ;;  %v277_v45 = vld [vmem:[#allocation2 + $0x48] sm:$0xff] }
  0x12   :  { %5595 = vmatpush3.msra.mxu0 %v104_v16  ;;  %5605 = vmatprep.subr.mxu1 %v194_v17  ;;  %v6259_v32 = vld [vmem:[%s6828_s5] sm:$0xff] }
  0x13   :  { %59 = vadd.xlane.f32.xlu0 %v58_v3  ;;  %5596 = vmatprep.subr.mxu0 %v103_v18  ;;  %v85_v34 = vrot.slane %v6259_v32, %v6254_v31  ;;  %v91_v36 = vrot.slane %v6259_v32, %v6262_v33  ;;  %v276_v46 = vld [vmem:[#allocation2 + $0x40] sm:$0xff] }
  0x14   :  { %5606 = vmatpush3.msra.mxu1 %v194_v17  ;;  %5597 = vmatpush3.msra.mxu0 %v103_v18  ;;  %v101_v48 = vld [vmem:[#allocation2 + $0x60] sm:$0xff] }
  0x15   :  { %5607 = vmatprep.subr.mxu1 %v193_v19  ;;  %5598 = vmatprep.subr.mxu0 %v102_v20  ;;  %v199_v49 = vrot.slane %v101_v48, %v6262_v33  ;;  %v109_v50 = vrot.slane %v101_v48, %v6254_v31  ;;  %v6305_v61 = vld [vmem:[%s6824_s1 + $0x1] ss:$0 sm:$0xff]  ;;  %v6310_v63 = vld [vmem:[%s6824_s1] ss:$0 sm:$0xff] }
  0x16   :  { %5608 = vmatpush3.msra.mxu1 %v193_v19  ;;  %5599 = vmatpush3.msra.mxu0 %v102_v20  ;;  %v768_v19 = vld [vmem:[#allocation2 + $0xb8] sm:$0xff]  ;;  %v679_v48 = vld [vmem:[#allocation2 + $0xe0] sm:$0xff] }
  0x17   :  { %5609 = vmatprep.subr.mxu1 %v192_v21  ;;  %5614 = vmatprep.subr.mxu0 %v279_v22  ;;  %v684_v20 = vld [vmem:[#allocation2 + $0x98] sm:$0xff] }
  0x18   :  { %5610 = vmatpush3.msra.mxu1 %v192_v21 }
  0x19   :  { %5630 = vmatprep.subr.mxu1 %v6193_v47 }
  0x98   :  { %v57_v4 = vpop.xlane.xlu0 %56 }
  0x99   :  { %v62_v5 = vmul.f32 0.03125, %v57_v4 }
  0x9b   :  { %v64_v6 = vsub.f32 %v6236_v0, %v62_v5 }
  0x9c   :  { %v60_v7 = vpop.xlane.xlu0 %59 }
  0x9d   :  { %v63_v8 = vmul.f32 0.03125, %v60_v7  ;;  %v66_v9 = vmul.f32 %v64_v6, %v64_v6 }
  0x9f   :  { %v65_v10 = vsub.f32 %v6241_v1, %v63_v8  ;;  %v68_v11 = vsel %vm54_vm0, %v66_v9, 0.0 }
  0xa0   :  { %69 = vadd.xlane.f32.xlu1 %v68_v11 }
  0xa1   :  { %v67_v12 = vmul.f32 %v65_v10, %v65_v10 }
  0xa3   :  { %v71_v13 = vsel %vm54_vm0, %v67_v12, 0.0 }
  0xa4   :  { %72 = vadd.xlane.f32.xlu1 %v71_v13 }
 0x129   :  { %v70_v23 = vpop.xlane.xlu1 %69 }
 0x12a   :  { %v74_v24 = vmul.f32 0.03125, %v70_v23 }
 0x12c   :  { %v76_v25 = vadd.f32 1e-06, %v74_v24 }
 0x12d   :  { %v73_v26 = vpop.xlane.xlu1 %72 }
 0x12e   :  { %6081 = vrsqrt.f32 %v76_v25  ;;  %v75_v28 = vmul.f32 0.03125, %v73_v26  ;;  %v767_v26 = vld [vmem:[#allocation2 + $0xb0] sm:$0xff] }
 0x130   :  { %v77_v29 = vadd.f32 1e-06, %v75_v28  ;;  %v683_v28 = vld [vmem:[#allocation2 + $0x90] sm:$0xff] }
 0x132   :  { %6083 = vrsqrt.f32 %v77_v29  ;;  %v766_v29 = vld [vmem:[#allocation2 + $0xa8] sm:$0xff] }
 0x13b   :  { %v6082_v35 = vpop.eup %6081 }
 0x13c   :  { %v80_v37 = vmul.f32 %v6082_v35, %v64_v6  ;;  %v765_v35 = vld [vmem:[#allocation2 + $0xa0] sm:$0xff] }
 0x13e   :  { %v86_v38 = vmul.f32 %v85_v34, %v80_v37  ;;  %v852_v37 = vld [vmem:[#allocation2 + $0xd8] sm:$0xff] }
 0x13f   :  { %v6084_v39 = vpop.eup %6083 }
 0x140   :  { %v6268_v40 = vadd.f32 %v91_v36, %v86_v38  ;;  %v81_v41 = vmul.f32 %v6084_v39, %v65_v10  ;;  %v851_v38 = vld [vmem:[#allocation2 + $0xd0] sm:$0xff]  ;;  %v850_v39 = vld [vmem:[#allocation2 + $0xc8] sm:$0xff] }
 0x142   :  { %v87_v42 = vmul.f32 %v85_v34, %v81_v41  ;;  %5600 = vmatprep.mubr.msk.f32.mxu0 %vm54_vm0, %v6268_v40  ;;  %5611 = vmatprep.mubr.msk.f32.mxu1 %vm54_vm0, %v6268_v40  ;;  %v682_v34 = vld [vmem:[#allocation2 + $0x88] sm:$0xff]  ;;  %v849_v41 = vld [vmem:[#allocation2 + $0xc0] sm:$0xff] }
 0x144   :  { %v6274_v43 = vadd.f32 %v91_v36, %v87_v42  ;;  %v681_v36 = vld [vmem:[#allocation2 + $0x80] sm:$0xff] }
 0x146   :  { %5601 = vmatmul.mubr.msk.f32.vlgmr.msra.gmra.mxu0 %vm54_vm0, %v6274_v43  ;;  %5612 = vmatmul.mubr.msk.f32.vlgmr.msra.gmra.mxu1 %vm54_vm0, %v6274_v43 }
 0x147   :  { %5615 = vmatpush3.msra.mxu0 %v279_v22  ;;  %5622 = vmatprep.mubr.msk.f32.mxu0 %vm54_vm0, %v6268_v40 }
 0x148   :  { %5616 = vmatprep.subr.mxu0 %v278_v44  ;;  %5632 = vmatprep.mubr.msk.f32.mxu1 %vm6194_vm1, %v6193_v47 }
 0x149   :  { %5617 = vmatpush3.msra.mxu0 %v278_v44 }
 0x14a   :  { %5618 = vmatprep.subr.mxu0 %v277_v45 }
 0x14b   :  { %5619 = vmatpush3.msra.mxu0 %v277_v45 }
 0x14c   :  { %5620 = vmatprep.subr.mxu0 %v276_v46 }
 0x14d   :  { %5621 = vmatpush3.msra.mxu0 %v276_v46 }
 0x14e   :  { %5623 = vmatmul.mubr.msk.f32.vlgmr.msra.gmra.mxu0 %vm54_vm0, %v6274_v43  ;;  %5625 = vmatprep.subr.mxu0 %v6193_v47 }
 0x14f   :  { %5627 = vmatprep.mubr.msk.f32.mxu0 %vm6194_vm1, %v6193_v47 }
 0x206   :  { %v5602_v51 = vpop.f32.mrf.mxu0  ;;  %v5613_v52 = vpop.f32.mrf.mxu1 }
 0x207   :  { %v272_v53 = vadd.f32 %v5613_v52, %v199_v49  ;;  %v188_v57 = vadd.f32 %v5602_v51, %v109_v50  ;;  %v688_v52 = vrot.slane %v679_v48, %v6254_v31 }
 0x208   :  { %v266_v54 = vpop.f32.mrf.mxu1  ;;  %v182_v55 = vpop.f32.mrf.mxu0 }
 0x209   :  { %v267_v56 = vadd.f32 %v266_v54, %v199_v49  ;;  %5631 = vmatpush3.xpose.msk.msra.mxu1 %vm54_vm0, %v272_v53  ;;  %v183_v58 = vadd.f32 %v182_v55, %v109_v50  ;;  %v772_v50 = vrot.slane %v679_v48, %v6262_v33 }
 0x20a   :  { %5640 = vmatprep.subr.mxu1 %v6193_v47 }
 0x20b   :  { %5626 = vmatpush3.xpose.msk.msra.mxu0 %vm54_vm0, %v267_v56 }
 0x20c   :  { %5633 = vmatmul.mubr.msk.f32.vlgmr.msra.gmra.mxu1 %vm54_vm0, %v188_v57  ;;  %5635 = vmatprep.subr.mxu0 %v6193_v47 }
 0x20d   :  { %5642 = vmatprep.mubr.msk.f32.mxu1 %vm6194_vm1, %v6193_v47 }
 0x20e   :  { %v5624_v59 = vpop.f32.mrf.mxu0  ;;  %5628 = vmatmul.mubr.msk.f32.vlgmr.msra.gmra.mxu0 %vm54_vm0, %v183_v58 }
 0x20f   :  { %5641 = vmatpush3.msra.mxu1 %v5624_v59  ;;  %5637 = vmatprep.mubr.msk.f32.mxu0 %vm6194_vm1, %v6193_v47 }
 0x210   :  { %v346_v60 = vpop.f32.mrf.mxu0  ;;  %5656 = vmatprep.subr.mxu1 %v768_v19 }
 0x211   :  { %5636 = vmatpush3.msra.mxu0 %v346_v60 }
 0x212   :  { %5645 = vmatprep.subr.mxu0 %v684_v20 }
 0x2cc   :  { %v503_v62 = vpop.f32.mrf.mxu1 }
 0x2cd   :  { %v504_v2 = vadd.f32 %v6305_v61, %v503_v62 }
 0x2ce   :  { %v427_v3 = vpop.f32.mrf.mxu0  ;;  %v5634_v4 = vpop.f32.mrf.mxu1 }
 0x2cf   :  { %v428_v5 = vadd.f32 %v6310_v63, %v427_v3  ;;  %v511_v6 = vsel %vm507_vm2, %v504_v2, -inf }
 0x2d0   :  { %512 = vmax.xlane.f32.xlu0 %v511_v6  ;;  %v5629_v7 = vpop.f32.mrf.mxu0 }
 0x2d1   :  { %v508_v8 = vsel %vm507_vm2, %v428_v5, -inf }
 0x2d2   :  { %509 = vmax.xlane.f32.xlu1 %v508_v8 }
 0x359   :  { %v513_v9 = vpop.xlane.xlu0 %512 }
 0x35a   :  { %v515_v10 = vsub.f32 %v504_v2, %v513_v9 }
 0x35b   :  { %v510_v11 = vpop.xlane.xlu1 %509 }
 0x35c   :  { %v518_v12 = vmul.f32 1.442695, %v515_v10  ;;  %v514_v13 = vsub.f32 %v428_v5, %v510_v11 }
 0x35e   :  { %6085 = vpow2.f32 %v518_v12  ;;  %v516_v14 = vmul.f32 1.442695, %v514_v13 }
 0x360   :  { %6087 = vpow2.f32 %v516_v14 }
 0x36b   :  { %v6086_v15 = vpop.eup %6085 }
 0x36c   :  { %v523_v16 = vsel %vm507_vm2, %v6086_v15, 0.0 }
 0x36d   :  { %v6088_v17 = vpop.eup %6087  ;;  %524 = vadd.xlane.f32.xlu0 %v523_v16 }
 0x36e   :  { %v520_v18 = vsel %vm507_vm2, %v6088_v17, 0.0 }
 0x36f   :  { %521 = vadd.xlane.f32.xlu1 %v520_v18 }
 0x3f6   :  { %v525_v21 = vpop.xlane.xlu0 %524 }
 0x3f7   :  { %6089 = vrcp.f32 %v525_v21 }
 0x3f8   :  { %v522_v22 = vpop.xlane.xlu1 %521 }
 0x3f9   :  { %6091 = vrcp.f32 %v522_v22 }
 0x404   :  { %v6090_v23 = vpop.eup %6089 }
 0x405   :  { %v529_v24 = vmul.f32 %v6090_v23, %v6086_v15 }
 0x406   :  { %v6092_v25 = vpop.eup %6091 }
 0x407   :  { %5643 = vmatmul.mubr.msk.f32.vlgmr.msra.gmra.mxu1 %vm507_vm2, %v529_v24  ;;  %v528_v27 = vmul.f32 %v6092_v25, %v6088_v17  ;;  %v1255_v25 = vld [vmem:[#allocation2 + $0x110] sm:$0xff] }
 0x408   :  { %5657 = vmatpush3.msra.mxu1 %v768_v19  ;;  %5664 = vmatprep.mubr.msk.f32.mxu1 %vm54_vm0, %v6268_v40  ;;  %v1256_v19 = vld [vmem:[#allocation2 + $0x118] sm:$0xff] }
 0x409   :  { %5658 = vmatprep.subr.mxu1 %v767_v26  ;;  %5638 = vmatmul.mubr.msk.f32.vlgmr.msra.gmra.mxu0 %vm507_vm2, %v528_v27  ;;  %v1254_v27 = vld [vmem:[#allocation2 + $0x108] sm:$0xff] }
 0x40a   :  { %5646 = vmatpush3.msra.mxu0 %v684_v20  ;;  %5659 = vmatpush3.msra.mxu1 %v767_v26  ;;  %v1340_v20 = vld [vmem:[#allocation2 + $0x138] sm:$0xff] }
 0x40b   :  { %5647 = vmatprep.subr.mxu0 %v683_v28  ;;  %5653 = vmatprep.mubr.msk.f32.mxu0 %vm54_vm0, %v6268_v40 }
 0x40c   :  { %5660 = vmatprep.subr.mxu1 %v766_v29  ;;  %5648 = vmatpush3.msra.mxu0 %v683_v28 }
 0x40d   :  { %5661 = vmatpush3.msra.mxu1 %v766_v29  ;;  %5649 = vmatprep.subr.mxu0 %v682_v34  ;;  %v1253_v29 = vld [vmem:[#allocation2 + $0x100] sm:$0xff] }
 0x40e   :  { %5662 = vmatprep.subr.mxu1 %v765_v35  ;;  %5650 = vmatpush3.msra.mxu0 %v682_v34  ;;  %v1339_v34 = vld [vmem:[#allocation2 + $0x130] sm:$0xff] }
 0x40f   :  { %5663 = vmatpush3.msra.mxu1 %v765_v35  ;;  %5651 = vmatprep.subr.mxu0 %v681_v36  ;;  %v1338_v35 = vld [vmem:[#allocation2 + $0x128] sm:$0xff] }
 0x410   :  { %5665 = vmatmul.mubr.msk.f32.vlgmr.msra.gmra.mxu1 %vm54_vm0, %v6274_v43  ;;  %5652 = vmatpush3.msra.mxu0 %v681_v36  ;;  %v1424_v36 = vld [vmem:[#allocation2 + $0x158] sm:$0xff] }
 0x411   :  { %5654 = vmatmul.mubr.msk.f32.vlgmr.msra.gmra.mxu0 %vm54_vm0, %v6274_v43  ;;  %5667 = vmatprep.subr.mxu0 %v852_v37 }
 0x412   :  { %5668 = vmatpush3.msra.mxu0 %v852_v37  ;;  %5675 = vmatprep.mubr.msk.f32.mxu0 %vm54_vm0, %v6268_v40  ;;  %v1337_v37 = vld [vmem:[#allocation2 + $0x120] sm:$0xff] }
 0x413   :  { %5669 = vmatprep.subr.mxu0 %v851_v38  ;;  %5678 = vmatprep.subr.mxu1 %v6193_v47 }
 0x414   :  { %5670 = vmatpush3.msra.mxu0 %v851_v38  ;;  %5680 = vmatprep.mubr.msk.f32.mxu1 %vm6194_vm1, %v6193_v47  ;;  %v1423_v38 = vld [vmem:[#allocation2 + $0x150] sm:$0xff] }
 0x415   :  { %5671 = vmatprep.subr.mxu0 %v850_v39 }
 0x416   :  { %5672 = vmatpush3.msra.mxu0 %v850_v39  ;;  %v1422_v39 = vld [vmem:[#allocation2 + $0x148] sm:$0xff] }
 0x417   :  { %5673 = vmatprep.subr.mxu0 %v849_v41 }
 0x418   :  { %5674 = vmatpush3.msra.mxu0 %v849_v41  ;;  %v1421_v41 = vld [vmem:[#allocation2 + $0x140] sm:$0xff] }
 0x419   :  { %5676 = vmatmul.mubr.msk.f32.vlgmr.msra.gmra.mxu0 %vm54_vm0, %v6274_v43  ;;  %5688 = vmatprep.subr.mxu0 %v6193_v47 }
 0x41a   :  { %5690 = vmatprep.mubr.msk.f32.mxu0 %vm6194_vm1, %v6193_v47 }
 0x4c7   :  { %v6338_v42 = vpop.f32.mrf.mxu1 }
 0x4c9   :  { %v6340_v44 = vpop.f32.mrf.mxu0  ;;  %v5644_v45 = vpop.f32.mrf.mxu1 }
 0x4ca   :  { %v96_v45 = vsub.s32 2, %v6251_v30 }
 0x4cb   :  { %v5639_v46 = vpop.f32.mrf.mxu0 }
 0x4cc   :  { %v97_v46 = vrot.slane %v6259_v32, %v96_v45 }
 0x4ce   :  { %v98_v48 = vadd.f32 %v97_v46, %v6236_v0 }
 0x4d0   :  { %v5666_v49 = vpop.f32.mrf.mxu1 }
 0x4d1   :  { %v5655_v51 = vpop.f32.mrf.mxu0  ;;  %v845_v57 = vadd.f32 %v5666_v49, %v772_v50  ;;  %v99_v49 = vadd.f32 %v97_v46, %v6241_v1  ;;  %v1910_v46 = vld [vmem:[#allocation2 + $0x1a8] sm:$0xff] }
 0x4d2   :  { %v839_v53 = vpop.f32.mrf.mxu1  ;;  %v761_v59 = vadd.f32 %v5655_v51, %v688_v52 }
 0x4d3   :  { %v840_v54 = vadd.f32 %v839_v53, %v772_v50  ;;  %v755_v55 = vpop.f32.mrf.mxu0  ;;  %v676_v50 = vadd.f32 %v6340_v44, %v98_v48  ;;  %v1996_v48 = vld [vmem:[#allocation2 + $0x1d8] sm:$0xff] }
 0x4d4   :  { %v756_v56 = vadd.f32 %v755_v55, %v688_v52 }
 0x4d5   :  { %5679 = vmatpush3.xpose.msk.msra.mxu1 %vm54_vm0, %v840_v54  ;;  %v677_v54 = vadd.f32 %v6338_v42, %v99_v49  ;;  %v1909_v49 = vld [vmem:[#allocation2 + $0x1a0] sm:$0xff] }
 0x4d6   :  { %5683 = vmatprep.subr.mxu1 %v6193_v47 }
 0x4d8   :  { %5681 = vmatmul.mubr.msk.f32.vlgmr.msra.gmra.mxu1 %vm54_vm0, %v756_v56 }
 0x4d9   :  { %5684 = vmatpush3.xpose.msk.msra.mxu1 %vm54_vm0, %v845_v57  ;;  %v5677_v58 = vpop.f32.mrf.mxu0  ;;  %5685 = vmatprep.mubr.msk.f32.mxu1 %vm6194_vm1, %v6193_v47 }
 0x4da   :  { %5693 = vmatprep.subr.mxu1 %v6193_v47 }
 0x4db   :  { %v919_v60 = vpop.f32.mrf.mxu0 }
 0x4dc   :  { %5686 = vmatmul.mubr.msk.f32.vlgmr.msra.gmra.mxu1 %vm54_vm0, %v761_v59  ;;  %5689 = vmatpush3.msra.mxu0 %v919_v60  ;;  %v1251_v59 = vld [vmem:[#allocation2 + $0x160] sm:$0xff] }
 0x4dd   :  { %5694 = vmatpush3.msra.mxu1 %v5677_v58  ;;  %5695 = vmatprep.mubr.msk.f32.mxu1 %vm6194_vm1, %v6193_v47  ;;  %v1260_v44 = vrot.slane %v1251_v59, %v6254_v31 }
 0x4de   :  { %5698 = vmatprep.subr.mxu0 %v1256_v19  ;;  %5709 = vmatprep.subr.mxu1 %v1340_v20 }
 0x598   :  { %v1000_v62 = vpop.f32.mrf.mxu1 }
 0x599   :  { %v1001_v2 = vadd.f32 %v6310_v63, %v1000_v62  ;;  %v1344_v62 = vrot.slane %v1251_v59, %v6262_v33 }
 0x59a   :  { %v5682_v3 = vpop.f32.mrf.mxu1 }
 0x59b   :  { %v1080_v4 = vsel %vm507_vm2, %v1001_v2, -inf }
 0x59c   :  { %1081 = vmax.xlane.f32.xlu1 %v1080_v4  ;;  %v1076_v5 = vpop.f32.mrf.mxu1 }
 0x59d   :  { %v1077_v6 = vadd.f32 %v6305_v61, %v1076_v5 }
 0x59e   :  { %v5687_v7 = vpop.f32.mrf.mxu1 }
 0x59f   :  { %v1083_v8 = vsel %vm507_vm2, %v1077_v6, -inf }
 0x5a0   :  { %1084 = vmax.xlane.f32.xlu0 %v1083_v8 }
 0x625   :  { %v1082_v9 = vpop.xlane.xlu1 %1081 }
 0x626   :  { %v1086_v10 = vsub.f32 %v1001_v2, %v1082_v9 }
 0x628   :  { %v1088_v11 = vmul.f32 1.442695, %v1086_v10 }
 0x629   :  { %v1085_v12 = vpop.xlane.xlu0 %1084 }
 0x62a   :  { %6093 = vpow2.f32 %v1088_v11  ;;  %v1087_v13 = vsub.f32 %v1077_v6, %v1085_v12 }
 0x62c   :  { %v1090_v14 = vmul.f32 1.442695, %v1087_v13 }
 0x62e   :  { %6095 = vpow2.f32 %v1090_v14 }
 0x637   :  { %v6094_v15 = vpop.eup %6093 }
 0x638   :  { %v1092_v16 = vsel %vm507_vm2, %v6094_v15, 0.0 }
 0x639   :  { %1093 = vadd.xlane.f32.xlu1 %v1092_v16 }
 0x63b   :  { %v6096_v17 = vpop.eup %6095 }
 0x63c   :  { %v1095_v18 = vsel %vm507_vm2, %v6096_v17, 0.0 }
 0x63d   :  { %1096 = vadd.xlane.f32.xlu0 %v1095_v18 }
 0x6c2   :  { %v1094_v21 = vpop.xlane.xlu1 %1093 }
 0x6c3   :  { %6097 = vrcp.f32 %v1094_v21 }
 0x6c6   :  { %v1097_v22 = vpop.xlane.xlu0 %1096 }
 0x6c7   :  { %6099 = vrcp.f32 %v1097_v22 }
 0x6d0   :  { %v6098_v23 = vpop.eup %6097 }
 0x6d1   :  { %v1100_v24 = vmul.f32 %v6098_v23, %v6094_v15 }
 0x6d3   :  { %5691 = vmatmul.mubr.msk.f32.vlgmr.msra.gmra.mxu0 %vm507_vm2, %v1100_v24 }
 0x6d4   :  { %v6100_v26 = vpop.eup %6099  ;;  %5699 = vmatpush3.msra.mxu0 %v1256_v19  ;;  %5706 = vmatprep.mubr.msk.f32.mxu0 %vm54_vm0, %v6268_v40 }
 0x6d5   :  { %5700 = vmatprep.subr.mxu0 %v1255_v25  ;;  %v1101_v28 = vmul.f32 %v6100_v26, %v6096_v17  ;;  %v1912_v26 = vld [vmem:[#allocation2 + $0x1b8] sm:$0xff] }
 0x6d6   :  { %5701 = vmatpush3.msra.mxu0 %v1255_v25  ;;  %v1828_v25 = vld [vmem:[#allocation2 + $0x198] sm:$0xff] }
 0x6d7   :  { %5702 = vmatprep.subr.mxu0 %v1254_v27  ;;  %5696 = vmatmul.mubr.msk.f32.vlgmr.msra.gmra.mxu1 %vm507_vm2, %v1101_v28 }
 0x6d8   :  { %5703 = vmatpush3.msra.mxu0 %v1254_v27  ;;  %5710 = vmatpush3.msra.mxu1 %v1340_v20 }
 0x6d9   :  { %5704 = vmatprep.subr.mxu0 %v1253_v29  ;;  %5711 = vmatprep.subr.mxu1 %v1339_v34 }
 0x6da   :  { %5717 = vmatprep.mubr.msk.f32.mxu1 %vm54_vm0, %v6268_v40  ;;  %5705 = vmatpush3.msra.mxu0 %v1253_v29 }
 0x6db   :  { %5712 = vmatpush3.msra.mxu1 %v1339_v34  ;;  %5707 = vmatmul.mubr.msk.f32.vlgmr.msra.gmra.mxu0 %vm54_vm0, %v6274_v43 }
 0x6dc   :  { %5713 = vmatprep.subr.mxu1 %v1338_v35  ;;  %5720 = vmatprep.subr.mxu0 %v1424_v36 }
 0x6dd   :  { %5714 = vmatpush3.msra.mxu1 %v1338_v35  ;;  %5721 = vmatpush3.msra.mxu0 %v1424_v36  ;;  %v1827_v35 = vld [vmem:[#allocation2 + $0x190] sm:$0xff] }
 0x6de   :  { %5728 = vmatprep.mubr.msk.f32.mxu0 %vm54_vm0, %v6268_v40  ;;  %5715 = vmatprep.subr.mxu1 %v1337_v37 }
 0x6df   :  { %5722 = vmatprep.subr.mxu0 %v1423_v38  ;;  %5716 = vmatpush3.msra.mxu1 %v1337_v37  ;;  %v1826_v37 = vld [vmem:[#allocation2 + $0x188] sm:$0xff] }
 0x6e0   :  { %5723 = vmatpush3.msra.mxu0 %v1423_v38  ;;  %5718 = vmatmul.mubr.msk.f32.vlgmr.msra.gmra.mxu1 %vm54_vm0, %v6274_v43 }
 0x6e1   :  { %5724 = vmatprep.subr.mxu0 %v1422_v39  ;;  %5731 = vmatprep.subr.mxu1 %v6193_v47 }
 0x6e2   :  { %5725 = vmatpush3.msra.mxu0 %v1422_v39  ;;  %5733 = vmatprep.mubr.msk.f32.mxu1 %vm6194_vm1, %v6193_v47  ;;  %v1825_v39 = vld [vmem:[#allocation2 + $0x180] sm:$0xff] }
 0x6e3   :  { %5726 = vmatprep.subr.mxu0 %v1421_v41 }
 0x6e4   :  { %5727 = vmatpush3.msra.mxu0 %v1421_v41  ;;  %v1911_v41 = vld [vmem:[#allocation2 + $0x1b0] sm:$0xff] }
 0x6e5   :  { %5729 = vmatmul.mubr.msk.f32.vlgmr.msra.gmra.mxu0 %vm54_vm0, %v6274_v43  ;;  %5741 = vmatprep.subr.mxu0 %v6193_v47 }
 0x6e6   :  { %5743 = vmatprep.mubr.msk.f32.mxu0 %vm6194_vm1, %v6193_v47 }
 0x793   :  { %v1171_v51 = vpop.f32.mrf.mxu0 }
 0x794   :  { %v6387_v52 = vadd.f32 %v1171_v51, %v676_v50  ;;  %v1995_v50 = vld [vmem:[#allocation2 + $0x1d0] sm:$0xff]  ;;  %v1994_v51 = vld [vmem:[#allocation2 + $0x1c8] sm:$0xff] }
 0x795   :  { %v5692_v53 = vpop.f32.mrf.mxu0 }
 0x796   :  { %v1993_v53 = vld [vmem:[#allocation2 + $0x1c0] sm:$0xff] }
 0x797   :  { %v1244_v55 = vpop.f32.mrf.mxu1 }
 0x798   :  { %v6390_v56 = vadd.f32 %v1244_v55, %v677_v54 }
 0x799   :  { %v5697_v57 = vpop.f32.mrf.mxu1 }
 0x79b   :  { %v5708_v58 = vpop.f32.mrf.mxu0 }
 0x79c   :  { %v1333_v6 = vadd.f32 %v5708_v58, %v1260_v44 }
 0x79d   :  { %v1327_v2 = vpop.f32.mrf.mxu0 }
 0x79e   :  { %v1328_v4 = vadd.f32 %v1327_v2, %v1260_v44 }
 0x7a0   :  { %v5719_v60 = vpop.f32.mrf.mxu1 }
 0x7a1   :  { %v1417_v42 = vadd.f32 %v5719_v60, %v1344_v62 }
 0x7a2   :  { %v1411_v0 = vpop.f32.mrf.mxu1 }
 0x7a3   :  { %v1412_v1 = vadd.f32 %v1411_v0, %v1344_v62  ;;  %v1823_v62 = vld [vmem:[#allocation2 + $0x1e0] sm:$0xff] }
 0x7a5   :  { %v5730_v3 = vpop.f32.mrf.mxu0  ;;  %5732 = vmatpush3.xpose.msk.msra.mxu1 %vm54_vm0, %v1412_v1 }
 0x7a6   :  { %5736 = vmatprep.subr.mxu1 %v6193_v47 }
 0x7a7   :  { %v1491_v5 = vpop.f32.mrf.mxu0 }
 0x7a8   :  { %5742 = vmatpush3.msra.mxu0 %v1491_v5  ;;  %5734 = vmatmul.mubr.msk.f32.vlgmr.msra.gmra.mxu1 %vm54_vm0, %v1328_v4 }
 0x7a9   :  { %5737 = vmatpush3.xpose.msk.msra.mxu1 %vm54_vm0, %v1417_v42  ;;  %5738 = vmatprep.mubr.msk.f32.mxu1 %vm6194_vm1, %v6193_v47 }
 0x7aa   :  { %5746 = vmatprep.subr.mxu1 %v6193_v47  ;;  %5751 = vmatprep.subr.mxu0 %v1828_v25 }
 0x7ac   :  { %5739 = vmatmul.mubr.msk.f32.vlgmr.msra.gmra.mxu1 %vm54_vm0, %v1333_v6 }
 0x7ad   :  { %5747 = vmatpush3.msra.mxu1 %v5730_v3  ;;  %5748 = vmatprep.mubr.msk.f32.mxu1 %vm6194_vm1, %v6193_v47  ;;  %v1832_v3 = vrot.slane %v1823_v62, %v6254_v31 }
 0x7ae   :  { %5762 = vmatprep.subr.mxu1 %v1912_v26 }
 0x868   :  { %v1572_v7 = vpop.f32.mrf.mxu1 }
 0x869   :  { %v1573_v8 = vadd.f32 %v6310_v63, %v1572_v7 }
 0x86a   :  { %v5735_v9 = vpop.f32.mrf.mxu1 }
 0x86b   :  { %v1652_v10 = vsel %vm507_vm2, %v1573_v8, -inf }
 0x86c   :  { %1653 = vmax.xlane.f32.xlu1 %v1652_v10  ;;  %v1648_v11 = vpop.f32.mrf.mxu1 }
 0x86d   :  { %v1649_v12 = vadd.f32 %v6305_v61, %v1648_v11 }
 0x86e   :  { %v5740_v13 = vpop.f32.mrf.mxu1 }
 0x86f   :  { %v1655_v14 = vsel %vm507_vm2, %v1649_v12, -inf }
 0x870   :  { %1656 = vmax.xlane.f32.xlu0 %v1655_v14 }
 0x8f5   :  { %v1654_v15 = vpop.xlane.xlu1 %1653 }
 0x8f6   :  { %v1658_v16 = vsub.f32 %v1573_v8, %v1654_v15 }
 0x8f8   :  { %v1660_v17 = vmul.f32 1.442695, %v1658_v16 }
 0x8f9   :  { %v1657_v18 = vpop.xlane.xlu0 %1656 }
 0x8fa   :  { %6101 = vpow2.f32 %v1660_v17  ;;  %v1659_v19 = vsub.f32 %v1649_v12, %v1657_v18 }
 0x8fc   :  { %v1662_v20 = vmul.f32 1.442695, %v1659_v19 }
 0x8fe   :  { %6103 = vpow2.f32 %v1662_v20 }
 0x907   :  { %v6102_v21 = vpop.eup %6101 }
 0x908   :  { %v1664_v22 = vsel %vm507_vm2, %v6102_v21, 0.0 }
 0x909   :  { %1665 = vadd.xlane.f32.xlu1 %v1664_v22 }
 0x90b   :  { %v6104_v23 = vpop.eup %6103 }
 0x90c   :  { %v1667_v24 = vsel %vm507_vm2, %v6104_v23, 0.0 }
 0x90d   :  { %1668 = vadd.xlane.f32.xlu0 %v1667_v24 }
 0x992   :  { %v1666_v27 = vpop.xlane.xlu1 %1665 }
 0x993   :  { %6105 = vrcp.f32 %v1666_v27 }
 0x996   :  { %v1669_v28 = vpop.xlane.xlu0 %1668 }
 0x997   :  { %6107 = vrcp.f32 %v1669_v28 }
 0x9a0   :  { %v6106_v29 = vpop.eup %6105 }
 0x9a1   :  { %v1672_v34 = vmul.f32 %v6106_v29, %v6102_v21 }
 0x9a3   :  { %5744 = vmatmul.mubr.msk.f32.vlgmr.msra.gmra.mxu0 %vm507_vm2, %v1672_v34 }
 0x9a4   :  { %v6108_v36 = vpop.eup %6107  ;;  %5752 = vmatpush3.msra.mxu0 %v1828_v25  ;;  %5759 = vmatprep.mubr.msk.f32.mxu0 %vm54_vm0, %v6268_v40 }
 0x9a5   :  { %5753 = vmatprep.subr.mxu0 %v1827_v35  ;;  %v1673_v38 = vmul.f32 %v6108_v36, %v6104_v23 }
 0x9a6   :  { %5754 = vmatpush3.msra.mxu0 %v1827_v35 }
 0x9a7   :  { %5755 = vmatprep.subr.mxu0 %v1826_v37  ;;  %5749 = vmatmul.mubr.msk.f32.vlgmr.msra.gmra.mxu1 %vm507_vm2, %v1673_v38 }
 0x9a8   :  { %5756 = vmatpush3.msra.mxu0 %v1826_v37  ;;  %5763 = vmatpush3.msra.mxu1 %v1912_v26 }
 0x9a9   :  { %5757 = vmatprep.subr.mxu0 %v1825_v39  ;;  %5764 = vmatprep.subr.mxu1 %v1911_v41 }
 0x9aa   :  { %5770 = vmatprep.mubr.msk.f32.mxu1 %vm54_vm0, %v6268_v40  ;;  %5758 = vmatpush3.msra.mxu0 %v1825_v39 }
 0x9ab   :  { %5765 = vmatpush3.msra.mxu1 %v1911_v41  ;;  %5760 = vmatmul.mubr.msk.f32.vlgmr.msra.gmra.mxu0 %vm54_vm0, %v6274_v43 }
 0x9ac   :  { %5766 = vmatprep.subr.mxu1 %v1910_v46  ;;  %5773 = vmatprep.subr.mxu0 %v1996_v48 }
 0x9ad   :  { %5767 = vmatpush3.msra.mxu1 %v1910_v46  ;;  %5774 = vmatpush3.msra.mxu0 %v1996_v48 }
 0x9ae   :  { %5781 = vmatprep.mubr.msk.f32.mxu0 %vm54_vm0, %v6268_v40  ;;  %5768 = vmatprep.subr.mxu1 %v1909_v49 }
 0x9af   :  { %5775 = vmatprep.subr.mxu0 %v1995_v50  ;;  %5769 = vmatpush3.msra.mxu1 %v1909_v49 }
 0x9b0   :  { %5776 = vmatpush3.msra.mxu0 %v1995_v50  ;;  %5771 = vmatmul.mubr.msk.f32.vlgmr.msra.gmra.mxu1 %vm54_vm0, %v6274_v43 }
 0x9b1   :  { %5777 = vmatprep.subr.mxu0 %v1994_v51  ;;  %5784 = vmatprep.subr.mxu1 %v6193_v47 }
 0x9b2   :  { %5778 = vmatpush3.msra.mxu0 %v1994_v51  ;;  %5786 = vmatprep.mubr.msk.f32.mxu1 %vm6194_vm1, %v6193_v47 }
 0x9b3   :  { %5779 = vmatprep.subr.mxu0 %v1993_v53 }
 0x9b4   :  { %5780 = vmatpush3.msra.mxu0 %v1993_v53 }
 0x9b5   :  { %5782 = vmatmul.mubr.msk.f32.vlgmr.msra.gmra.mxu0 %vm54_vm0, %v6274_v43  ;;  %5794 = vmatprep.subr.mxu0 %v6193_v47  ;;  %v1916_v43 = vrot.slane %v1823_v62, %v6262_v33  ;;  %v2530_v62 = vld [vmem:[%s6827_s4 + $0x38] sm:$0xff] }
 0x9b6   :  { %5796 = vmatprep.mubr.msk.f32.mxu0 %vm6194_vm1, %v6193_v47 }
 0xa63   :  { %v1743_v40 = vpop.f32.mrf.mxu0 }
 0xa64   :  { %v6431_v54 = vadd.f32 %v1743_v40, %v6387_v52 }
 0xa65   :  { %v5745_v55 = vpop.f32.mrf.mxu0 }
 0xa67   :  { %v1816_v57 = vpop.f32.mrf.mxu1 }
 0xa68   :  { %v6434_v58 = vadd.f32 %v1816_v57, %v6390_v56  ;;  %v2435_v57 = vld [vmem:[%s6826_s3 + $0x18] sm:$0xff] }
 0xa69   :  { %v5750_v59 = vpop.f32.mrf.mxu1 }
 0xa6a   :  { %v2433_v59 = vld [vmem:[%s6826_s3 + $0x8] sm:$0xff] }
 0xa6b   :  { %v5761_v60 = vpop.f32.mrf.mxu0 }
 0xa6c   :  { %v1905_v5 = vadd.f32 %v5761_v60, %v1832_v3  ;;  %v2432_v60 = vld [vmem:[%s6826_s3] sm:$0xff] }
 0xa6d   :  { %v1899_v1 = vpop.f32.mrf.mxu0 }
 0xa6e   :  { %v1900_v52 = vadd.f32 %v1899_v1, %v1832_v3 }
 0xa70   :  { %v5772_v0 = vpop.f32.mrf.mxu1 }
 0xa71   :  { %v1989_v42 = vadd.f32 %v5772_v0, %v1916_v43  ;;  %v2529_v0 = vld [vmem:[%s6827_s4 + $0x30] sm:$0xff] }
 0xa72   :  { %v1983_v2 = vpop.f32.mrf.mxu1 }
 0xa73   :  { %v1984_v44 = vadd.f32 %v1983_v2, %v1916_v43  ;;  %v2528_v43 = vld [vmem:[%s6827_s4 + $0x28] sm:$0xff]  ;;  %v2527_v2 = vld [vmem:[%s6827_s4 + $0x20] sm:$0xff] }
 0xa75   :  { %v5783_v4 = vpop.f32.mrf.mxu0  ;;  %5785 = vmatpush3.xpose.msk.msra.mxu1 %vm54_vm0, %v1984_v44 }
 0xa76   :  { %5789 = vmatprep.subr.mxu1 %v6193_v47 }
 0xa77   :  { %v2063_v56 = vpop.f32.mrf.mxu0 }
 0xa78   :  { %5795 = vmatpush3.msra.mxu0 %v2063_v56  ;;  %5787 = vmatmul.mubr.msk.f32.vlgmr.msra.gmra.mxu1 %vm54_vm0, %v1900_v52  ;;  %v2422_v56 = vsub.s32 3, %v6251_v30 }
 0xa79   :  { %5790 = vmatpush3.xpose.msk.msra.mxu1 %vm54_vm0, %v1989_v42  ;;  %5791 = vmatprep.mubr.msk.f32.mxu1 %vm6194_vm1, %v6193_v47 }
 0xa7a   :  { %5799 = vmatprep.subr.mxu1 %v6193_v47  ;;  %5804 = vmatprep.subr.mxu0 %v2435_v57 }
 0xa7c   :  { %5792 = vmatmul.mubr.msk.f32.vlgmr.msra.gmra.mxu1 %vm54_vm0, %v1905_v5  ;;  %v2428_v5 = vsub.s32 4, %v6251_v30 }
 0xa7d   :  { %5800 = vmatpush3.msra.mxu1 %v5783_v4  ;;  %5801 = vmatprep.mubr.msk.f32.mxu1 %vm6194_vm1, %v6193_v47 }
 0xa7e   :  { %5815 = vmatprep.subr.mxu1 %v2530_v62 }
 0xb38   :  { %v2144_v6 = vpop.f32.mrf.mxu1 }
 0xb39   :  { %v2145_v7 = vadd.f32 %v6310_v63, %v2144_v6  ;;  %v2423_v6 = vrot.slane %v6259_v32, %v2422_v56 }
 0xb3a   :  { %v5788_v8 = vpop.f32.mrf.mxu1 }
 0xb3b   :  { %v2224_v9 = vsel %vm507_vm2, %v2145_v7, -inf }
 0xb3c   :  { %2225 = vmax.xlane.f32.xlu0 %v2224_v9  ;;  %v2220_v10 = vpop.f32.mrf.mxu1  ;;  %v2429_v9 = vrot.slane %v6259_v32, %v2428_v5 }
 0xb3d   :  { %v2221_v11 = vadd.f32 %v6305_v61, %v2220_v10 }
 0xb3e   :  { %v5793_v12 = vpop.f32.mrf.mxu1 }
 0xb3f   :  { %v2227_v13 = vsel %vm507_vm2, %v2221_v11, -inf }
 0xb40   :  { %2228 = vmax.xlane.f32.xlu1 %v2227_v13 }
 0xbc5   :  { %v2226_v14 = vpop.xlane.xlu0 %2225 }
 0xbc6   :  { %v2230_v15 = vsub.f32 %v2145_v7, %v2226_v14 }
 0xbc8   :  { %v2232_v16 = vmul.f32 1.442695, %v2230_v15 }
 0xbc9   :  { %v2229_v17 = vpop.xlane.xlu1 %2228 }
 0xbca   :  { %6109 = vpow2.f32 %v2232_v16  ;;  %v2231_v18 = vsub.f32 %v2221_v11, %v2229_v17  ;;  %v2526_v16 = vld [vmem:[%s6827_s4 + $0x18] sm:$0xff]  ;;  %v2525_v17 = vld [vmem:[%s6827_s4 + $0x10] sm:$0xff] }
 0xbcc   :  { %v2234_v19 = vmul.f32 1.442695, %v2231_v18  ;;  %v2524_v18 = vld [vmem:[%s6827_s4 + $0x8] sm:$0xff] }
 0xbce   :  { %6111 = vpow2.f32 %v2234_v19  ;;  %v2523_v19 = vld [vmem:[%s6827_s4] sm:$0xff] }
 0xbd7   :  { %v6110_v63 = vpop.eup %6109 }
 0xbd8   :  { %v2236_v20 = vsel %vm507_vm2, %v6110_v63, 0.0 }
 0xbd9   :  { %2237 = vadd.xlane.f32.xlu0 %v2236_v20 }
 0xbdb   :  { %v6112_v21 = vpop.eup %6111 }
 0xbdc   :  { %v2239_v22 = vsel %vm507_vm2, %v6112_v21, 0.0 }
 0xbdd   :  { %2240 = vadd.xlane.f32.xlu1 %v2239_v22 }
 0xc62   :  { %v2238_v61 = vpop.xlane.xlu0 %2237 }
 0xc63   :  { %6113 = vrcp.f32 %v2238_v61 }
 0xc66   :  { %v2241_v23 = vpop.xlane.xlu1 %2240 }
 0xc67   :  { %6115 = vrcp.f32 %v2241_v23 }
 0xc70   :  { %v6114_v24 = vpop.eup %6113 }
 0xc71   :  { %v2244_v25 = vmul.f32 %v6114_v24, %v6110_v63  ;;  %v2438_v63 = vsub.s32 5, %v6251_v30 }
 0xc73   :  { %5797 = vmatmul.mubr.msk.f32.vlgmr.msra.gmra.mxu0 %vm507_vm2, %v2244_v25  ;;  %v2439_v20 = vrot.slane %v6259_v32, %v2438_v63 }
 0xc74   :  { %v6116_v26 = vpop.eup %6115  ;;  %5805 = vmatpush3.msra.mxu0 %v2435_v57  ;;  %v2671_v57 = vld [vmem:[#allocation2 + $0x218] sm:$0xff] }
 0xc75   :  { %v2245_v27 = vmul.f32 %v6116_v26, %v6112_v21  ;;  %v2533_v26 = vsub.s32 6, %v6251_v30 }
 0xc77   :  { %5802 = vmatmul.mubr.msk.f32.vlgmr.msra.gmra.mxu1 %vm507_vm2, %v2245_v27  ;;  %v6165_v27 = vld [vmem:[%s6828_s5] sm:$0xff] }
 0xc78   :  { %5816 = vmatpush3.msra.mxu1 %v2530_v62  ;;  %v2534_v32 = vrot.slane %v6165_v27, %v2533_v26  ;;  %v2669_v62 = vld [vmem:[#allocation2 + $0x208] sm:$0xff] }
 0xc79   :  { %5817 = vmatprep.subr.mxu1 %v2529_v0 }
 0xc7a   :  { %5818 = vmatpush3.msra.mxu1 %v2529_v0  ;;  %v2843_v0 = vld [vmem:[#allocation2 + $0x248] sm:$0xff] }
 0xc7b   :  { %5819 = vmatprep.subr.mxu1 %v2528_v43 }
 0xc7c   :  { %5820 = vmatpush3.msra.mxu1 %v2528_v43  ;;  %v2668_v43 = vld [vmem:[#allocation2 + $0x200] sm:$0xff] }
 0xc7d   :  { %5821 = vmatprep.subr.mxu1 %v2527_v2 }
 0xc7e   :  { %5822 = vmatpush3.msra.mxu1 %v2527_v2  ;;  %v2842_v2 = vld [vmem:[#allocation2 + $0x240] sm:$0xff] }
 0xc7f   :  { %5823 = vmatprep.subr.mxu1 %v2526_v16 }
 0xc80   :  { %5824 = vmatpush3.msra.mxu1 %v2526_v16 }
 0xc81   :  { %5825 = vmatprep.subr.mxu1 %v2525_v17 }
 0xc82   :  { %5826 = vmatpush3.msra.mxu1 %v2525_v17 }
 0xc83   :  { %5827 = vmatprep.subr.mxu1 %v2524_v18 }
 0xc84   :  { %5828 = vmatpush3.msra.mxu1 %v2524_v18  ;;  %v2760_v18 = vld [vmem:[#allocation2 + $0x230] sm:$0xff] }
 0xc85   :  { %5829 = vmatprep.subr.mxu1 %v2523_v19 }
 0xc86   :  { %5830 = vmatpush3.msra.mxu1 %v2523_v19  ;;  %v2759_v19 = vld [vmem:[#allocation2 + $0x228] sm:$0xff] }
 0xd33   :  { %v2315_v28 = vpop.f32.mrf.mxu0 }
 0xd34   :  { %v6457_v29 = vadd.f32 %v2315_v28, %v6431_v54 }
 0xd35   :  { %v5798_v34 = vpop.f32.mrf.mxu0 }
 0xd36   :  { %v2394_v35 = vsel %vm54_vm0, %v6457_v29, 0.0 }
 0xd37   :  { %2395 = vadd.xlane.f32.xlu0 %v2394_v35  ;;  %v2388_v36 = vpop.f32.mrf.mxu1 }
 0xd38   :  { %v6462_v37 = vadd.f32 %v2388_v36, %v6434_v58  ;;  %v2434_v58 = vld [vmem:[%s6826_s3 + $0x10] sm:$0xff] }
 0xd39   :  { %v5803_v38 = vpop.f32.mrf.mxu1  ;;  %5806 = vmatprep.subr.mxu0 %v2434_v58 }
 0xd3a   :  { %v2397_v39 = vsel %vm54_vm0, %v6462_v37, 0.0  ;;  %5807 = vmatpush3.msra.mxu0 %v2434_v58  ;;  %v2845_v58 = vld [vmem:[#allocation2 + $0x258] sm:$0xff] }
 0xd3b   :  { %2398 = vadd.xlane.f32.xlu1 %v2397_v39  ;;  %5808 = vmatprep.subr.mxu0 %v2433_v59 }
 0xd3c   :  { %5809 = vmatpush3.msra.mxu0 %v2433_v59  ;;  %5856 = vmatprep.subr.mxu1 %v2845_v58  ;;  %v2670_v59 = vld [vmem:[#allocation2 + $0x210] sm:$0xff] }
 0xd3d   :  { %5810 = vmatprep.subr.mxu0 %v2432_v60 }
 0xd3e   :  { %5811 = vmatpush3.msra.mxu0 %v2432_v60  ;;  %v2844_v60 = vld [vmem:[#allocation2 + $0x250] sm:$0xff] }
 0xd3f   :  { %5834 = vmatprep.subr.mxu0 %v2671_v57 }
 0xdc0   :  { %v2396_v41 = vpop.xlane.xlu0 %2395 }
 0xdc1   :  { %v2400_v46 = vmul.f32 0.03125, %v2396_v41 }
 0xdc3   :  { %v2402_v48 = vsub.f32 %v6457_v29, %v2400_v46 }
 0xdc4   :  { %v2399_v49 = vpop.xlane.xlu1 %2398 }
 0xdc5   :  { %v2401_v50 = vmul.f32 0.03125, %v2399_v49  ;;  %v2404_v51 = vmul.f32 %v2402_v48, %v2402_v48 }
 0xdc7   :  { %v2403_v53 = vsub.f32 %v6462_v37, %v2401_v50  ;;  %v2406_v40 = vsel %vm54_vm0, %v2404_v51, 0.0 }
 0xdc8   :  { %2407 = vadd.xlane.f32.xlu0 %v2406_v40 }
 0xdc9   :  { %v2405_v54 = vmul.f32 %v2403_v53, %v2403_v53 }
 0xdcb   :  { %v2409_v55 = vsel %vm54_vm0, %v2405_v54, 0.0 }
 0xdcc   :  { %2410 = vadd.xlane.f32.xlu1 %v2409_v55 }
 0xe51   :  { %v2408_v1 = vpop.xlane.xlu0 %2407 }
 0xe52   :  { %v2412_v44 = vmul.f32 0.03125, %v2408_v1  ;;  %v2761_v1 = vld [vmem:[#allocation2 + $0x238] sm:$0xff] }
 0xe54   :  { %v2414_v3 = vadd.f32 1e-06, %v2412_v44 }
 0xe55   :  { %v2411_v4 = vpop.xlane.xlu1 %2410 }
 0xe56   :  { %6117 = vrsqrt.f32 %v2414_v3  ;;  %v2413_v52 = vmul.f32 0.03125, %v2411_v4 }
 0xe58   :  { %v2415_v42 = vadd.f32 1e-06, %v2413_v52 }
 0xe5a   :  { %6119 = vrsqrt.f32 %v2415_v42 }
 0xe63   :  { %v6118_v7 = vpop.eup %6117 }
 0xe64   :  { %v2418_v8 = vmul.f32 %v6118_v7, %v2402_v48  ;;  %v6546_v7 = vld [vmem:[%s6828_s5 + $0x8] sm:$0xff] }
 0xe66   :  { %v2424_v10 = vmul.f32 %v2423_v6, %v2418_v8 }
 0xe67   :  { %v6120_v11 = vpop.eup %6119 }
 0xe68   :  { %v2419_v12 = vmul.f32 %v6120_v11, %v2403_v53  ;;  %v2430_v13 = vadd.f32 %v2429_v9, %v2424_v10 }
 0xe6a   :  { %v2425_v14 = vmul.f32 %v2423_v6, %v2419_v12  ;;  %5812 = vmatprep.mubr.msk.f32.mxu0 %vm54_vm0, %v2430_v13  ;;  %v2656_v13 = vrot.slane %v6546_v7, %v6262_v33 }
 0xe6c   :  { %v2431_v15 = vadd.f32 %v2429_v9, %v2425_v14  ;;  %v2650_v9 = vrot.slane %v6546_v7, %v6254_v31 }
 0xe6e   :  { %5813 = vmatmul.mubr.msk.f32.vlgmr.msra.gmra.mxu0 %vm54_vm0, %v2431_v15 }
 0xe6f   :  { %5835 = vmatpush3.msra.mxu0 %v2671_v57 }
 0xe70   :  { %5836 = vmatprep.subr.mxu0 %v2670_v59 }
 0xe71   :  { %5837 = vmatpush3.msra.mxu0 %v2670_v59 }
 0xe72   :  { %5838 = vmatprep.subr.mxu0 %v2669_v62 }
 0xe73   :  { %5839 = vmatpush3.msra.mxu0 %v2669_v62 }
 0xe74   :  { %5840 = vmatprep.subr.mxu0 %v2668_v43 }
 0xe75   :  { %5841 = vmatpush3.msra.mxu0 %v2668_v43 }
 0xe76   :  { %5845 = vmatprep.subr.mxu0 %v2761_v1 }
 0xf2e   :  { %v5814_v21 = vpop.f32.mrf.mxu0 }
 0xf2f   :  { %v2518_v22 = vadd.f32 %v5814_v21, %v2439_v20 }
 0xf30   :  { %v2512_v61 = vpop.f32.mrf.mxu0 }
 0xf31   :  { %v2513_v23 = vadd.f32 %v2512_v61, %v2439_v20  ;;  %v2522_v25 = vmax.f32 %v2518_v22, 0.0  ;;  %v2758_v20 = vld [vmem:[#allocation2 + $0x220] sm:$0xff] }
 0xf32   :  { %v2666_v22 = vld [vmem:[#allocation2 + $0x260] sm:$0xff] }
 0xf33   :  { %v2521_v24 = vmax.f32 %v2513_v23, 0.0  ;;  %v2765_v61 = vrot.slane %v2666_v22, %v6262_v33 }
 0xf35   :  { %5831 = vmatprep.mubr.msk.f32.mxu1 %vm2535_vm3, %v2521_v24  ;;  %v2675_v24 = vrot.slane %v2666_v22, %v6254_v31 }
 0xf36   :  { %5832 = vmatmul.mubr.msk.f32.vlgmr.msra.gmra.mxu1 %vm2535_vm3, %v2522_v25 }
 0xf37   :  { %5857 = vmatpush3.msra.mxu1 %v2845_v58 }
 0xf38   :  { %5858 = vmatprep.subr.mxu1 %v2844_v60 }
 0xf39   :  { %5859 = vmatpush3.msra.mxu1 %v2844_v60 }
 0xf3a   :  { %5860 = vmatprep.subr.mxu1 %v2843_v0 }
 0xf3b   :  { %5861 = vmatpush3.msra.mxu1 %v2843_v0 }
 0xf3c   :  { %5862 = vmatprep.subr.mxu1 %v2842_v2 }
 0xf3d   :  { %5863 = vmatpush3.msra.mxu1 %v2842_v2 }
 0xf3e   :  { %5872 = vmatprep.subr.mxu1 %v6193_v47 }
 0xff6   :  { %v5833_v28 = vpop.f32.mrf.mxu1 }
 0xff7   :  { %v2614_v34 = vadd.f32 %v5833_v28, %v2534_v32 }
 0xff8   :  { %v2608_v35 = vpop.f32.mrf.mxu1 }
 0xff9   :  { %v6529_v36 = vadd.f32 %v2614_v34, %v6462_v37  ;;  %v2609_v38 = vadd.f32 %v2608_v35, %v2534_v32 }
 0xffb   :  { %v6532_v39 = vadd.f32 %v2609_v38, %v6457_v29  ;;  %v2624_v41 = vsel %vm54_vm0, %v6529_v36, 0.0 }
 0xffc   :  { %2625 = vadd.xlane.f32.xlu1 %v2624_v41 }
 0xffd   :  { %v2621_v46 = vsel %vm54_vm0, %v6532_v39, 0.0 }
 0xffe   :  { %2622 = vadd.xlane.f32.xlu0 %v2621_v46 }
0x1085   :  { %v2626_v48 = vpop.xlane.xlu1 %2625 }
0x1086   :  { %v2628_v49 = vmul.f32 0.03125, %v2626_v48  ;;  %v6588_v48 = vld [vmem:[%s6824_s1 + $0x1] ss:$0 sm:$0xff] }
0x1087   :  { %v2623_v50 = vpop.xlane.xlu0 %2622 }
0x1088   :  { %v2630_v51 = vsub.f32 %v6529_v36, %v2628_v49  ;;  %v2627_v53 = vmul.f32 0.03125, %v2623_v50 }
0x108a   :  { %v2629_v37 = vsub.f32 %v6532_v39, %v2627_v53  ;;  %v2632_v40 = vmul.f32 %v2630_v51, %v2630_v51  ;;  %v6594_v53 = vld [vmem:[%s6824_s1] ss:$0 sm:$0xff] }
0x108c   :  { %v2636_v29 = vsel %vm54_vm0, %v2632_v40, 0.0  ;;  %v2631_v54 = vmul.f32 %v2629_v37, %v2629_v37 }
0x108d   :  { %2637 = vadd.xlane.f32.xlu1 %v2636_v29 }
0x108e   :  { %v2633_v55 = vsel %vm54_vm0, %v2631_v54, 0.0 }
0x108f   :  { %2634 = vadd.xlane.f32.xlu0 %v2633_v55 }
0x1116   :  { %v2638_v44 = vpop.xlane.xlu1 %2637 }
0x1117   :  { %v2640_v3 = vmul.f32 0.03125, %v2638_v44  ;;  %v3333_v44 = vld [vmem:[#allocation2 + $0x2b8] sm:$0xff] }
0x1118   :  { %v2635_v4 = vpop.xlane.xlu0 %2634 }
0x1119   :  { %v2642_v52 = vadd.f32 1e-06, %v2640_v3  ;;  %v2639_v42 = vmul.f32 0.03125, %v2635_v4  ;;  %v3249_v3 = vld [vmem:[#allocation2 + $0x298] sm:$0xff] }
0x111b   :  { %6121 = vrsqrt.f32 %v2642_v52  ;;  %v2641_v6 = vadd.f32 1e-06, %v2639_v42 }
0x111d   :  { %6123 = vrsqrt.f32 %v2641_v6 }
0x1128   :  { %v6122_v8 = vpop.eup %6121 }
0x1129   :  { %v2646_v10 = vmul.f32 %v6122_v8, %v2630_v51 }
0x112a   :  { %v6124_v11 = vpop.eup %6123 }
0x112b   :  { %v2645_v12 = vmul.f32 %v6124_v11, %v2629_v37  ;;  %v2652_v14 = vmul.f32 %v2650_v9, %v2646_v10  ;;  %v3248_v11 = vld [vmem:[#allocation2 + $0x290] sm:$0xff] }
0x112d   :  { %v2651_v15 = vmul.f32 %v2650_v9, %v2645_v12  ;;  %v6554_v17 = vadd.f32 %v2656_v13, %v2652_v14  ;;  %v3332_v9 = vld [vmem:[#allocation2 + $0x2b0] sm:$0xff]  ;;  %v3331_v12 = vld [vmem:[#allocation2 + $0x2a8] sm:$0xff]  ;;  %v3330_v14 = vld [vmem:[#allocation2 + $0x2a0] sm:$0xff] }
0x112f   :  { %v6552_v16 = vadd.f32 %v2656_v13, %v2651_v15  ;;  %v3247_v13 = vld [vmem:[#allocation2 + $0x288] sm:$0xff]  ;;  %v3246_v15 = vld [vmem:[#allocation2 + $0x280] sm:$0xff] }
0x1131   :  { %5842 = vmatprep.mubr.msk.f32.mxu0 %vm54_vm0, %v6552_v16  ;;  %5864 = vmatprep.mubr.msk.f32.mxu1 %vm54_vm0, %v6552_v16 }
0x1132   :  { %5843 = vmatmul.mubr.msk.f32.vlgmr.msra.gmra.mxu0 %vm54_vm0, %v6554_v17  ;;  %5865 = vmatmul.mubr.msk.f32.vlgmr.msra.gmra.mxu1 %vm54_vm0, %v6554_v17 }
0x1133   :  { %5846 = vmatpush3.msra.mxu0 %v2761_v1  ;;  %5853 = vmatprep.mubr.msk.f32.mxu0 %vm54_vm0, %v6552_v16 }
0x1134   :  { %5847 = vmatprep.subr.mxu0 %v2760_v18  ;;  %5874 = vmatprep.mubr.msk.f32.mxu1 %vm6194_vm1, %v6193_v47 }
0x1135   :  { %5848 = vmatpush3.msra.mxu0 %v2760_v18  ;;  %v3417_v18 = vld [vmem:[#allocation2 + $0x2d8] sm:$0xff] }
0x1136   :  { %5849 = vmatprep.subr.mxu0 %v2759_v19 }
0x1137   :  { %5850 = vmatpush3.msra.mxu0 %v2759_v19  ;;  %v3416_v19 = vld [vmem:[#allocation2 + $0x2d0] sm:$0xff] }
0x1138   :  { %5851 = vmatprep.subr.mxu0 %v2758_v20 }
0x1139   :  { %5852 = vmatpush3.msra.mxu0 %v2758_v20  ;;  %v3415_v20 = vld [vmem:[#allocation2 + $0x2c8] sm:$0xff] }
0x113a   :  { %5854 = vmatmul.mubr.msk.f32.vlgmr.msra.gmra.mxu0 %vm54_vm0, %v6554_v17  ;;  %5867 = vmatprep.subr.mxu0 %v6193_v47 }
0x113b   :  { %5869 = vmatprep.mubr.msk.f32.mxu0 %vm6194_vm1, %v6193_v47 }
0x11f2   :  { %v5844_v21 = vpop.f32.mrf.mxu0  ;;  %v5866_v35 = vpop.f32.mrf.mxu1 }
0x11f3   :  { %v2754_v34 = vadd.f32 %v5844_v21, %v2675_v24  ;;  %v3414_v21 = vld [vmem:[#allocation2 + $0x2c0] sm:$0xff] }
0x11f4   :  { %v2748_v23 = vpop.f32.mrf.mxu0  ;;  %v2912_v41 = vpop.f32.mrf.mxu1 }
0x11f5   :  { %v2749_v38 = vadd.f32 %v2748_v23, %v2675_v24 }
0x11fa   :  { %v5855_v25 = vpop.f32.mrf.mxu0 }
0x11fb   :  { %v2838_v27 = vadd.f32 %v5855_v25, %v2765_v61  ;;  %v3244_v25 = vld [vmem:[#allocation2 + $0x2e0] sm:$0xff] }
0x11fc   :  { %v2832_v32 = vpop.f32.mrf.mxu0 }
0x11fd   :  { %v2833_v28 = vadd.f32 %v2832_v32, %v2765_v61  ;;  %5873 = vmatpush3.xpose.msk.msra.mxu1 %vm54_vm0, %v2838_v27  ;;  %v3337_v32 = vrot.slane %v3244_v25, %v6262_v33 }
0x11fe   :  { %5882 = vmatprep.subr.mxu1 %v6193_v47 }
0x11ff   :  { %5868 = vmatpush3.xpose.msk.msra.mxu0 %vm54_vm0, %v2833_v28 }
0x1200   :  { %5875 = vmatmul.mubr.msk.f32.vlgmr.msra.gmra.mxu1 %vm54_vm0, %v2754_v34  ;;  %5877 = vmatprep.subr.mxu0 %v6193_v47  ;;  %v3253_v34 = vrot.slane %v3244_v25, %v6254_v31  ;;  %v3988_v25 = vld [vmem:[#allocation2 + $0x350] sm:$0xff] }
0x1201   :  { %5883 = vmatpush3.msra.mxu1 %v5866_v35  ;;  %5884 = vmatprep.mubr.msk.f32.mxu1 %vm6194_vm1, %v6193_v47 }
0x1202   :  { %5870 = vmatmul.mubr.msk.f32.vlgmr.msra.gmra.mxu0 %vm54_vm0, %v2749_v38  ;;  %5898 = vmatprep.subr.mxu1 %v3333_v44 }
0x1203   :  { %5878 = vmatpush3.msra.mxu0 %v2912_v41  ;;  %5879 = vmatprep.mubr.msk.f32.mxu0 %vm6194_vm1, %v6193_v47 }
0x1204   :  { %5887 = vmatprep.subr.mxu0 %v3249_v3 }
0x12c0   :  { %v3069_v46 = vpop.f32.mrf.mxu1 }
0x12c1   :  { %v3070_v49 = vadd.f32 %v6588_v48, %v3069_v46 }
0x12c2   :  { %v2993_v50 = vpop.f32.mrf.mxu0  ;;  %v5876_v51 = vpop.f32.mrf.mxu1 }
0x12c3   :  { %v2994_v37 = vadd.f32 %v6594_v53, %v2993_v50  ;;  %v3076_v40 = vsel %vm507_vm2, %v3070_v49, -inf }
0x12c4   :  { %3077 = vmax.xlane.f32.xlu0 %v3076_v40  ;;  %v5871_v29 = vpop.f32.mrf.mxu0 }
0x12c5   :  { %v3073_v54 = vsel %vm507_vm2, %v2994_v37, -inf }
0x12c6   :  { %3074 = vmax.xlane.f32.xlu1 %v3073_v54 }
0x134d   :  { %v3078_v55 = vpop.xlane.xlu0 %3077 }
0x134e   :  { %v3080_v57 = vsub.f32 %v3070_v49, %v3078_v55 }
0x134f   :  { %v3075_v58 = vpop.xlane.xlu1 %3074 }
0x1350   :  { %v3083_v59 = vmul.f32 1.442695, %v3080_v57  ;;  %v3079_v60 = vsub.f32 %v2994_v37, %v3075_v58 }
0x1352   :  { %6125 = vpow2.f32 %v3083_v59  ;;  %v3081_v62 = vmul.f32 1.442695, %v3079_v60 }
0x1354   :  { %6127 = vpow2.f32 %v3081_v62 }
0x135f   :  { %v6126_v0 = vpop.eup %6125 }
0x1360   :  { %v3088_v43 = vsel %vm507_vm2, %v6126_v0, 0.0 }
0x1361   :  { %v6128_v2 = vpop.eup %6127  ;;  %3089 = vadd.xlane.f32.xlu0 %v3088_v43 }
0x1362   :  { %v3085_v1 = vsel %vm507_vm2, %v6128_v2, 0.0 }
0x1363   :  { %3086 = vadd.xlane.f32.xlu1 %v3085_v1 }
0x13ea   :  { %v3090_v4 = vpop.xlane.xlu0 %3089 }
0x13eb   :  { %6129 = vrcp.f32 %v3090_v4 }
0x13ec   :  { %v3087_v52 = vpop.xlane.xlu1 %3086 }
0x13ed   :  { %6131 = vrcp.f32 %v3087_v52 }
0x13f8   :  { %v6130_v42 = vpop.eup %6129 }
0x13f9   :  { %v3094_v6 = vmul.f32 %v6130_v42, %v6126_v0 }
0x13fa   :  { %v6132_v8 = vpop.eup %6131 }
0x13fb   :  { %5885 = vmatmul.mubr.msk.f32.vlgmr.msra.gmra.mxu1 %vm507_vm2, %v3094_v6  ;;  %v3093_v10 = vmul.f32 %v6132_v8, %v6128_v2  ;;  %v3821_v6 = vld [vmem:[#allocation2 + $0x318] sm:$0xff] }
0x13fc   :  { %5899 = vmatpush3.msra.mxu1 %v3333_v44  ;;  %5906 = vmatprep.mubr.msk.f32.mxu1 %vm54_vm0, %v6552_v16  ;;  %v3905_v8 = vld [vmem:[#allocation2 + $0x338] sm:$0xff] }
0x13fd   :  { %5900 = vmatprep.subr.mxu1 %v3332_v9  ;;  %5880 = vmatmul.mubr.msk.f32.vlgmr.msra.gmra.mxu0 %vm507_vm2, %v3093_v10 }
0x13fe   :  { %5888 = vmatpush3.msra.mxu0 %v3249_v3  ;;  %5901 = vmatpush3.msra.mxu1 %v3332_v9 }
0x13ff   :  { %5889 = vmatprep.subr.mxu0 %v3248_v11  ;;  %5895 = vmatprep.mubr.msk.f32.mxu0 %vm54_vm0, %v6552_v16 }
0x1400   :  { %5902 = vmatprep.subr.mxu1 %v3331_v12  ;;  %5890 = vmatpush3.msra.mxu0 %v3248_v11 }
0x1401   :  { %5903 = vmatpush3.msra.mxu1 %v3331_v12  ;;  %5891 = vmatprep.subr.mxu0 %v3247_v13 }
0x1402   :  { %5904 = vmatprep.subr.mxu1 %v3330_v14  ;;  %5892 = vmatpush3.msra.mxu0 %v3247_v13  ;;  %v3820_v13 = vld [vmem:[#allocation2 + $0x310] sm:$0xff] }
0x1403   :  { %5905 = vmatpush3.msra.mxu1 %v3330_v14  ;;  %5893 = vmatprep.subr.mxu0 %v3246_v15 }
0x1404   :  { %5907 = vmatmul.mubr.msk.f32.vlgmr.msra.gmra.mxu1 %vm54_vm0, %v6554_v17  ;;  %5894 = vmatpush3.msra.mxu0 %v3246_v15  ;;  %v3819_v15 = vld [vmem:[#allocation2 + $0x308] sm:$0xff] }
0x1405   :  { %5896 = vmatmul.mubr.msk.f32.vlgmr.msra.gmra.mxu0 %vm54_vm0, %v6554_v17  ;;  %5909 = vmatprep.subr.mxu0 %v3417_v18 }
0x1406   :  { %5910 = vmatpush3.msra.mxu0 %v3417_v18  ;;  %5917 = vmatprep.mubr.msk.f32.mxu0 %vm54_vm0, %v6552_v16 }
0x1407   :  { %5911 = vmatprep.subr.mxu0 %v3416_v19  ;;  %5920 = vmatprep.subr.mxu1 %v6193_v47 }
0x1408   :  { %5912 = vmatpush3.msra.mxu0 %v3416_v19  ;;  %5922 = vmatprep.mubr.msk.f32.mxu1 %vm6194_vm1, %v6193_v47  ;;  %v3818_v19 = vld [vmem:[#allocation2 + $0x300] sm:$0xff] }
0x1409   :  { %5913 = vmatprep.subr.mxu0 %v3415_v20 }
0x140a   :  { %5914 = vmatpush3.msra.mxu0 %v3415_v20  ;;  %v3904_v20 = vld [vmem:[#allocation2 + $0x330] sm:$0xff] }
0x140b   :  { %5915 = vmatprep.subr.mxu0 %v3414_v21 }
0x140c   :  { %5916 = vmatpush3.msra.mxu0 %v3414_v21  ;;  %v3903_v21 = vld [vmem:[#allocation2 + $0x328] sm:$0xff] }
0x140d   :  { %5918 = vmatmul.mubr.msk.f32.vlgmr.msra.gmra.mxu0 %vm54_vm0, %v6554_v17  ;;  %5930 = vmatprep.subr.mxu0 %v6193_v47 }
0x140e   :  { %5932 = vmatprep.mubr.msk.f32.mxu0 %vm6194_vm1, %v6193_v47 }
0x14bb   :  { %v6621_v22 = vpop.f32.mrf.mxu1 }
0x14bd   :  { %v6623_v61 = vpop.f32.mrf.mxu0  ;;  %v5886_v23 = vpop.f32.mrf.mxu1 }
0x14be   :  { %v3989_v23 = vld [vmem:[#allocation2 + $0x358] sm:$0xff] }
0x14bf   :  { %v5881_v24 = vpop.f32.mrf.mxu0 }
0x14c0   :  { %v3902_v24 = vld [vmem:[#allocation2 + $0x320] sm:$0xff] }
0x14c4   :  { %v5908_v27 = vpop.f32.mrf.mxu1 }
0x14c5   :  { %v5897_v28 = vpop.f32.mrf.mxu0  ;;  %v3410_v49 = vadd.f32 %v5908_v27, %v3337_v32  ;;  %v3987_v27 = vld [vmem:[#allocation2 + $0x348] sm:$0xff] }
0x14c6   :  { %v3404_v35 = vpop.f32.mrf.mxu1  ;;  %v3326_v51 = vadd.f32 %v5897_v28, %v3253_v34  ;;  %v2662_v28 = vrot.slane %v6546_v7, %v96_v45 }
0x14c7   :  { %v3405_v38 = vadd.f32 %v3404_v35, %v3337_v32  ;;  %v3320_v41 = vpop.f32.mrf.mxu0  ;;  %v3986_v32 = vld [vmem:[#allocation2 + $0x340] sm:$0xff] }
0x14c8   :  { %v3321_v46 = vadd.f32 %v3320_v41, %v3253_v34  ;;  %v2663_v34 = vadd.f32 %v2662_v28, %v6532_v39  ;;  %v2664_v41 = vadd.f32 %v2662_v28, %v6529_v36 }
0x14c9   :  { %5921 = vmatpush3.xpose.msk.msra.mxu1 %vm54_vm0, %v3405_v38 }
0x14ca   :  { %5925 = vmatprep.subr.mxu1 %v6193_v47  ;;  %v3241_v35 = vadd.f32 %v6623_v61, %v2663_v34  ;;  %v4390_v34 = vld [vmem:[#allocation2 + $0x380] sm:$0xff] }
0x14cc   :  { %5923 = vmatmul.mubr.msk.f32.vlgmr.msra.gmra.mxu1 %vm54_vm0, %v3321_v46 }
0x14cd   :  { %5926 = vmatpush3.xpose.msk.msra.mxu1 %vm54_vm0, %v3410_v49  ;;  %v5919_v50 = vpop.f32.mrf.mxu0  ;;  %5927 = vmatprep.mubr.msk.f32.mxu1 %vm6194_vm1, %v6193_v47 }
0x14ce   :  { %5935 = vmatprep.subr.mxu1 %v6193_v47 }
0x14cf   :  { %v3484_v37 = vpop.f32.mrf.mxu0 }
0x14d0   :  { %5928 = vmatmul.mubr.msk.f32.vlgmr.msra.gmra.mxu1 %vm54_vm0, %v3326_v51  ;;  %5931 = vmatpush3.msra.mxu0 %v3484_v37 }
0x14d1   :  { %5936 = vmatpush3.msra.mxu1 %v5919_v50  ;;  %5937 = vmatprep.mubr.msk.f32.mxu1 %vm6194_vm1, %v6193_v47  ;;  %v3242_v50 = vadd.f32 %v6621_v22, %v2664_v41  ;;  %v4561_v41 = vld [vmem:[#allocation2 + $0x3d8] sm:$0xff] }
0x14d2   :  { %5940 = vmatprep.subr.mxu0 %v3821_v6  ;;  %5951 = vmatprep.subr.mxu1 %v3905_v8 }
0x158c   :  { %v3565_v40 = vpop.f32.mrf.mxu1 }
0x158d   :  { %v3566_v29 = vadd.f32 %v6594_v53, %v3565_v40 }
0x158e   :  { %v5924_v54 = vpop.f32.mrf.mxu1 }
0x158f   :  { %v3645_v55 = vsel %vm507_vm2, %v3566_v29, -inf  ;;  %v3816_v54 = vld [vmem:[#allocation2 + $0x360] sm:$0xff] }
0x1590   :  { %3646 = vmax.xlane.f32.xlu1 %v3645_v55  ;;  %v3641_v57 = vpop.f32.mrf.mxu1  ;;  %v3909_v45 = vrot.slane %v3816_v54, %v6262_v33 }
0x1591   :  { %v3642_v58 = vadd.f32 %v6588_v48, %v3641_v57 }
0x1592   :  { %v5929_v59 = vpop.f32.mrf.mxu1 }
0x1593   :  { %v3648_v60 = vsel %vm507_vm2, %v3642_v58, -inf }
0x1594   :  { %3649 = vmax.xlane.f32.xlu0 %v3648_v60 }
0x1619   :  { %v3647_v62 = vpop.xlane.xlu1 %3646 }
0x161a   :  { %v3651_v0 = vsub.f32 %v3566_v29, %v3647_v62 }
0x161c   :  { %v3653_v43 = vmul.f32 1.442695, %v3651_v0 }
0x161d   :  { %v3650_v2 = vpop.xlane.xlu0 %3649 }
0x161e   :  { %6133 = vpow2.f32 %v3653_v43  ;;  %v3652_v1 = vsub.f32 %v3642_v58, %v3650_v2  ;;  %v3825_v58 = vrot.slane %v3816_v54, %v6254_v31 }
0x1620   :  { %v3655_v44 = vmul.f32 1.442695, %v3652_v1 }
0x1622   :  { %6135 = vpow2.f32 %v3655_v44 }
0x162b   :  { %v6134_v3 = vpop.eup %6133 }
0x162c   :  { %v3657_v4 = vsel %vm507_vm2, %v6134_v3, 0.0 }
0x162d   :  { %3658 = vadd.xlane.f32.xlu1 %v3657_v4 }
0x162f   :  { %v6136_v52 = vpop.eup %6135 }
0x1630   :  { %v3660_v42 = vsel %vm507_vm2, %v6136_v52, 0.0 }
0x1631   :  { %3661 = vadd.xlane.f32.xlu0 %v3660_v42 }
0x16b6   :  { %v3659_v9 = vpop.xlane.xlu1 %3658 }
0x16b7   :  { %6137 = vrcp.f32 %v3659_v9 }
0x16ba   :  { %v3662_v10 = vpop.xlane.xlu0 %3661 }
0x16bb   :  { %6139 = vrcp.f32 %v3662_v10 }
0x16c4   :  { %v6138_v11 = vpop.eup %6137 }
0x16c5   :  { %v3665_v12 = vmul.f32 %v6138_v11, %v6134_v3 }
0x16c7   :  { %5933 = vmatmul.mubr.msk.f32.vlgmr.msra.gmra.mxu0 %vm507_vm2, %v3665_v12 }
0x16c8   :  { %v6140_v14 = vpop.eup %6139  ;;  %5941 = vmatpush3.msra.mxu0 %v3821_v6  ;;  %5948 = vmatprep.mubr.msk.f32.mxu0 %vm54_vm0, %v6552_v16 }
0x16c9   :  { %5942 = vmatprep.subr.mxu0 %v3820_v13  ;;  %v3666_v18 = vmul.f32 %v6140_v14, %v6136_v52 }
0x16ca   :  { %5943 = vmatpush3.msra.mxu0 %v3820_v13 }
0x16cb   :  { %5944 = vmatprep.subr.mxu0 %v3819_v15  ;;  %5938 = vmatmul.mubr.msk.f32.vlgmr.msra.gmra.mxu1 %vm507_vm2, %v3666_v18  ;;  %v4393_v18 = vld [vmem:[#allocation2 + $0x398] sm:$0xff] }
0x16cc   :  { %5945 = vmatpush3.msra.mxu0 %v3819_v15  ;;  %5952 = vmatpush3.msra.mxu1 %v3905_v8 }
0x16cd   :  { %5946 = vmatprep.subr.mxu0 %v3818_v19  ;;  %5953 = vmatprep.subr.mxu1 %v3904_v20 }
0x16ce   :  { %5959 = vmatprep.mubr.msk.f32.mxu1 %vm54_vm0, %v6552_v16  ;;  %5947 = vmatpush3.msra.mxu0 %v3818_v19  ;;  %v4477_v19 = vld [vmem:[#allocation2 + $0x3b8] sm:$0xff] }
0x16cf   :  { %5954 = vmatpush3.msra.mxu1 %v3904_v20  ;;  %5949 = vmatmul.mubr.msk.f32.vlgmr.msra.gmra.mxu0 %vm54_vm0, %v6554_v17 }
0x16d0   :  { %5955 = vmatprep.subr.mxu1 %v3903_v21  ;;  %5962 = vmatprep.subr.mxu0 %v3989_v23 }
0x16d1   :  { %5956 = vmatpush3.msra.mxu1 %v3903_v21  ;;  %5963 = vmatpush3.msra.mxu0 %v3989_v23 }
0x16d2   :  { %5970 = vmatprep.mubr.msk.f32.mxu0 %vm54_vm0, %v6552_v16  ;;  %5957 = vmatprep.subr.mxu1 %v3902_v24 }
0x16d3   :  { %5964 = vmatprep.subr.mxu0 %v3988_v25  ;;  %5958 = vmatpush3.msra.mxu1 %v3902_v24 }
0x16d4   :  { %5965 = vmatpush3.msra.mxu0 %v3988_v25  ;;  %5960 = vmatmul.mubr.msk.f32.vlgmr.msra.gmra.mxu1 %vm54_vm0, %v6554_v17  ;;  %v4392_v25 = vld [vmem:[#allocation2 + $0x390] sm:$0xff] }
0x16d5   :  { %5966 = vmatprep.subr.mxu0 %v3987_v27  ;;  %5973 = vmatprep.subr.mxu1 %v6193_v47 }
0x16d6   :  { %5967 = vmatpush3.msra.mxu0 %v3987_v27  ;;  %5975 = vmatprep.mubr.msk.f32.mxu1 %vm6194_vm1, %v6193_v47 }
0x16d7   :  { %5968 = vmatprep.subr.mxu0 %v3986_v32 }
0x16d8   :  { %5969 = vmatpush3.msra.mxu0 %v3986_v32  ;;  %v4391_v32 = vld [vmem:[#allocation2 + $0x388] sm:$0xff] }
0x16d9   :  { %5971 = vmatmul.mubr.msk.f32.vlgmr.msra.gmra.mxu0 %vm54_vm0, %v6554_v17  ;;  %5983 = vmatprep.subr.mxu0 %v6193_v47 }
0x16da   :  { %5985 = vmatprep.mubr.msk.f32.mxu0 %vm6194_vm1, %v6193_v47 }
0x1787   :  { %v3736_v38 = vpop.f32.mrf.mxu0 }
0x1788   :  { %v6669_v46 = vadd.f32 %v3736_v38, %v3241_v35  ;;  %v4476_v35 = vld [vmem:[#allocation2 + $0x3b0] sm:$0xff]  ;;  %v4475_v38 = vld [vmem:[#allocation2 + $0x3a8] sm:$0xff] }
0x1789   :  { %v5934_v49 = vpop.f32.mrf.mxu0 }
0x178a   :  { %v4474_v49 = vld [vmem:[#allocation2 + $0x3a0] sm:$0xff] }
0x178b   :  { %v3809_v51 = vpop.f32.mrf.mxu1 }
0x178c   :  { %v6672_v37 = vadd.f32 %v3809_v51, %v3242_v50  ;;  %v4560_v50 = vld [vmem:[#allocation2 + $0x3d0] sm:$0xff]  ;;  %v4559_v51 = vld [vmem:[#allocation2 + $0x3c8] sm:$0xff] }
0x178d   :  { %v5939_v40 = vpop.f32.mrf.mxu1 }
0x178e   :  { %v4558_v40 = vld [vmem:[#allocation2 + $0x3c0] sm:$0xff] }
0x178f   :  { %v5950_v29 = vpop.f32.mrf.mxu0 }
0x1790   :  { %v3898_v62 = vadd.f32 %v5950_v29, %v3825_v58 }
0x1791   :  { %v3892_v57 = vpop.f32.mrf.mxu0 }
0x1792   :  { %v3893_v59 = vadd.f32 %v3892_v57, %v3825_v58 }
0x1794   :  { %v5961_v55 = vpop.f32.mrf.mxu1 }
0x1795   :  { %v3982_v22 = vadd.f32 %v5961_v55, %v3909_v45 }
0x1796   :  { %v3976_v39 = vpop.f32.mrf.mxu1 }
0x1797   :  { %v3977_v61 = vadd.f32 %v3976_v39, %v3909_v45 }
0x1799   :  { %v5972_v36 = vpop.f32.mrf.mxu0  ;;  %5974 = vmatpush3.xpose.msk.msra.mxu1 %vm54_vm0, %v3977_v61  ;;  %v4388_v61 = vld [vmem:[#allocation2 + $0x3e0] sm:$0xff] }
0x179a   :  { %5978 = vmatprep.subr.mxu1 %v6193_v47 }
0x179b   :  { %v4056_v60 = vpop.f32.mrf.mxu0 }
0x179c   :  { %5984 = vmatpush3.msra.mxu0 %v4056_v60  ;;  %5976 = vmatmul.mubr.msk.f32.vlgmr.msra.gmra.mxu1 %vm54_vm0, %v3893_v59  ;;  %v4397_v60 = vrot.slane %v4388_v61, %v6254_v31 }
0x179d   :  { %5979 = vmatpush3.xpose.msk.msra.mxu1 %vm54_vm0, %v3982_v22  ;;  %5980 = vmatprep.mubr.msk.f32.mxu1 %vm6194_vm1, %v6193_v47 }
0x179e   :  { %5988 = vmatprep.subr.mxu1 %v6193_v47  ;;  %5993 = vmatprep.subr.mxu0 %v4393_v18 }
0x17a0   :  { %5981 = vmatmul.mubr.msk.f32.vlgmr.msra.gmra.mxu1 %vm54_vm0, %v3898_v62 }
0x17a1   :  { %5989 = vmatpush3.msra.mxu1 %v5972_v36  ;;  %5990 = vmatprep.mubr.msk.f32.mxu1 %vm6194_vm1, %v6193_v47 }
0x17a2   :  { %6004 = vmatprep.subr.mxu1 %v4477_v19 }
0x185c   :  { %v4137_v0 = vpop.f32.mrf.mxu1 }
0x185d   :  { %v4138_v43 = vadd.f32 %v6594_v53, %v4137_v0 }
0x185e   :  { %v5977_v2 = vpop.f32.mrf.mxu1 }
0x185f   :  { %v4217_v1 = vsel %vm507_vm2, %v4138_v43, -inf }
0x1860   :  { %4218 = vmax.xlane.f32.xlu1 %v4217_v1  ;;  %v4213_v44 = vpop.f32.mrf.mxu1 }
0x1861   :  { %v4214_v3 = vadd.f32 %v6588_v48, %v4213_v44 }
0x1862   :  { %v5982_v4 = vpop.f32.mrf.mxu1 }
0x1863   :  { %v4220_v52 = vsel %vm507_vm2, %v4214_v3, -inf }
0x1864   :  { %4221 = vmax.xlane.f32.xlu0 %v4220_v52 }
0x18e9   :  { %v4219_v42 = vpop.xlane.xlu1 %4218 }
0x18ea   :  { %v4223_v6 = vsub.f32 %v4138_v43, %v4219_v42 }
0x18ec   :  { %v4225_v8 = vmul.f32 1.442695, %v4223_v6 }
0x18ed   :  { %v4222_v9 = vpop.xlane.xlu0 %4221 }
0x18ee   :  { %6141 = vpow2.f32 %v4225_v8  ;;  %v4224_v10 = vsub.f32 %v4214_v3, %v4222_v9 }
0x18f0   :  { %v4227_v11 = vmul.f32 1.442695, %v4224_v10 }
0x18f2   :  { %6143 = vpow2.f32 %v4227_v11 }
0x18fb   :  { %v6142_v12 = vpop.eup %6141 }
0x18fc   :  { %v4229_v13 = vsel %vm507_vm2, %v6142_v12, 0.0 }
0x18fd   :  { %4230 = vadd.xlane.f32.xlu1 %v4229_v13 }
0x18ff   :  { %v6144_v14 = vpop.eup %6143 }
0x1900   :  { %v4232_v15 = vsel %vm507_vm2, %v6144_v14, 0.0 }
0x1901   :  { %4233 = vadd.xlane.f32.xlu0 %v4232_v15 }
0x1986   :  { %v4231_v20 = vpop.xlane.xlu1 %4230 }
0x1987   :  { %6145 = vrcp.f32 %v4231_v20 }
0x198a   :  { %v4234_v21 = vpop.xlane.xlu0 %4233 }
0x198b   :  { %6147 = vrcp.f32 %v4234_v21 }
0x1994   :  { %v6146_v23 = vpop.eup %6145 }
0x1995   :  { %v4237_v24 = vmul.f32 %v6146_v23, %v6142_v12 }
0x1997   :  { %5986 = vmatmul.mubr.msk.f32.vlgmr.msra.gmra.mxu0 %vm507_vm2, %v4237_v24 }
0x1998   :  { %v6148_v27 = vpop.eup %6147  ;;  %5994 = vmatpush3.msra.mxu0 %v4393_v18  ;;  %6001 = vmatprep.mubr.msk.f32.mxu0 %vm54_vm0, %v6552_v16 }
0x1999   :  { %5995 = vmatprep.subr.mxu0 %v4392_v25  ;;  %v4238_v28 = vmul.f32 %v6148_v27, %v6144_v14 }
0x199a   :  { %5996 = vmatpush3.msra.mxu0 %v4392_v25 }
0x199b   :  { %5997 = vmatprep.subr.mxu0 %v4391_v32  ;;  %5991 = vmatmul.mubr.msk.f32.vlgmr.msra.gmra.mxu1 %vm507_vm2, %v4238_v28 }
0x199c   :  { %5998 = vmatpush3.msra.mxu0 %v4391_v32  ;;  %6005 = vmatpush3.msra.mxu1 %v4477_v19 }
0x199d   :  { %5999 = vmatprep.subr.mxu0 %v4390_v34  ;;  %6006 = vmatprep.subr.mxu1 %v4476_v35 }
0x199e   :  { %6012 = vmatprep.mubr.msk.f32.mxu1 %vm54_vm0, %v6552_v16  ;;  %6000 = vmatpush3.msra.mxu0 %v4390_v34 }
0x199f   :  { %6007 = vmatpush3.msra.mxu1 %v4476_v35  ;;  %6002 = vmatmul.mubr.msk.f32.vlgmr.msra.gmra.mxu0 %vm54_vm0, %v6554_v17 }
0x19a0   :  { %6008 = vmatprep.subr.mxu1 %v4475_v38  ;;  %6015 = vmatprep.subr.mxu0 %v4561_v41 }
0x19a1   :  { %6009 = vmatpush3.msra.mxu1 %v4475_v38  ;;  %6016 = vmatpush3.msra.mxu0 %v4561_v41 }
0x19a2   :  { %6023 = vmatprep.mubr.msk.f32.mxu0 %vm54_vm0, %v6552_v16  ;;  %6010 = vmatprep.subr.mxu1 %v4474_v49 }
0x19a3   :  { %6017 = vmatprep.subr.mxu0 %v4560_v50  ;;  %6011 = vmatpush3.msra.mxu1 %v4474_v49 }
0x19a4   :  { %6018 = vmatpush3.msra.mxu0 %v4560_v50  ;;  %6013 = vmatmul.mubr.msk.f32.vlgmr.msra.gmra.mxu1 %vm54_vm0, %v6554_v17 }
0x19a5   :  { %6019 = vmatprep.subr.mxu0 %v4559_v51  ;;  %6026 = vmatprep.subr.mxu1 %v6193_v47 }
0x19a6   :  { %6020 = vmatpush3.msra.mxu0 %v4559_v51  ;;  %6028 = vmatprep.mubr.msk.f32.mxu1 %vm6194_vm1, %v6193_v47 }
0x19a7   :  { %6021 = vmatprep.subr.mxu0 %v4558_v40 }
0x19a8   :  { %6022 = vmatpush3.msra.mxu0 %v4558_v40 }
0x19a9   :  { %6024 = vmatmul.mubr.msk.f32.vlgmr.msra.gmra.mxu0 %vm54_vm0, %v6554_v17  ;;  %6036 = vmatprep.subr.mxu0 %v6193_v47  ;;  %v4481_v17 = vrot.slane %v4388_v61, %v6262_v33  ;;  %v5336_v61 = vld [vmem:[%s6826_s3 + $0x28] sm:$0xff] }
0x19aa   :  { %6038 = vmatprep.mubr.msk.f32.mxu0 %vm6194_vm1, %v6193_v47 }
0x1a57   :  { %v4308_v16 = vpop.f32.mrf.mxu0 }
0x1a58   :  { %v6713_v29 = vadd.f32 %v4308_v16, %v6669_v46 }
0x1a59   :  { %v5987_v54 = vpop.f32.mrf.mxu0 }
0x1a5b   :  { %v4381_v55 = vpop.f32.mrf.mxu1 }
0x1a5c   :  { %v6716_v45 = vadd.f32 %v4381_v55, %v6672_v37 }
0x1a5d   :  { %v5992_v39 = vpop.f32.mrf.mxu1 }
0x1a5e   :  { %v5338_v39 = vld [vmem:[%s6826_s3 + $0x38] sm:$0xff] }
0x1a5f   :  { %v6003_v57 = vpop.f32.mrf.mxu0 }
0x1a60   :  { %v4470_v43 = vadd.f32 %v6003_v57, %v4397_v60  ;;  %v5337_v57 = vld [vmem:[%s6826_s3 + $0x30] sm:$0xff] }
0x1a61   :  { %v4464_v59 = vpop.f32.mrf.mxu0 }
0x1a62   :  { %v4465_v46 = vadd.f32 %v4464_v59, %v4397_v60  ;;  %v5346_v59 = vld [vmem:[%s6827_s4 + $0x68] sm:$0xff] }
0x1a64   :  { %v6014_v58 = vpop.f32.mrf.mxu1 }
0x1a65   :  { %v4554_v0 = vadd.f32 %v6014_v58, %v4481_v17  ;;  %v5335_v58 = vld [vmem:[%s6826_s3 + $0x20] sm:$0xff] }
0x1a66   :  { %v4548_v36 = vpop.f32.mrf.mxu1 }
0x1a67   :  { %v4549_v22 = vadd.f32 %v4548_v36, %v4481_v17  ;;  %v5348_v17 = vld [vmem:[%s6827_s4 + $0x78] sm:$0xff]  ;;  %v5347_v36 = vld [vmem:[%s6827_s4 + $0x70] sm:$0xff] }
0x1a69   :  { %v6025_v62 = vpop.f32.mrf.mxu0  ;;  %6027 = vmatpush3.xpose.msk.msra.mxu1 %vm54_vm0, %v4549_v22  ;;  %v5345_v22 = vld [vmem:[%s6827_s4 + $0x60] sm:$0xff] }
0x1a6a   :  { %6031 = vmatprep.subr.mxu1 %v6193_v47 }
0x1a6b   :  { %v4628_v37 = vpop.f32.mrf.mxu0 }
0x1a6c   :  { %6037 = vmatpush3.msra.mxu0 %v4628_v37  ;;  %6029 = vmatmul.mubr.msk.f32.vlgmr.msra.gmra.mxu1 %vm54_vm0, %v4465_v46 }
0x1a6d   :  { %6032 = vmatpush3.xpose.msk.msra.mxu1 %vm54_vm0, %v4554_v0  ;;  %6033 = vmatprep.mubr.msk.f32.mxu1 %vm6194_vm1, %v6193_v47 }
0x1a6e   :  { %6041 = vmatprep.subr.mxu1 %v6193_v47  ;;  %6046 = vmatprep.subr.mxu0 %v5338_v39 }
0x1a70   :  { %6034 = vmatmul.mubr.msk.f32.vlgmr.msra.gmra.mxu1 %vm54_vm0, %v4470_v43 }
0x1a71   :  { %6042 = vmatpush3.msra.mxu1 %v6025_v62  ;;  %6043 = vmatprep.mubr.msk.f32.mxu1 %vm6194_vm1, %v6193_v47 }
0x1a72   :  { %6057 = vmatprep.subr.mxu1 %v5348_v17 }
0x1b2c   :  { %v4709_v2 = vpop.f32.mrf.mxu1 }
0x1b2d   :  { %v4710_v1 = vadd.f32 %v6594_v53, %v4709_v2  ;;  %v4988_v2 = vrot.slane %v6546_v7, %v2422_v56  ;;  %v5344_v56 = vld [vmem:[%s6827_s4 + $0x58] sm:$0xff] }
0x1b2e   :  { %v6030_v44 = vpop.f32.mrf.mxu1 }
0x1b2f   :  { %v4789_v3 = vsel %vm507_vm2, %v4710_v1, -inf }
0x1b30   :  { %4790 = vmax.xlane.f32.xlu0 %v4789_v3  ;;  %v4785_v4 = vpop.f32.mrf.mxu1  ;;  %v4994_v3 = vrot.slane %v6546_v7, %v2428_v5  ;;  %v5343_v5 = vld [vmem:[%s6827_s4 + $0x50] sm:$0xff] }
0x1b31   :  { %v4786_v52 = vadd.f32 %v6588_v48, %v4785_v4 }
0x1b32   :  { %v6035_v42 = vpop.f32.mrf.mxu1 }
0x1b33   :  { %v4792_v6 = vsel %vm507_vm2, %v4786_v52, -inf }
0x1b34   :  { %4793 = vmax.xlane.f32.xlu1 %v4792_v6 }
0x1bb9   :  { %v4791_v8 = vpop.xlane.xlu0 %4790 }
0x1bba   :  { %v4795_v9 = vsub.f32 %v4710_v1, %v4791_v8 }
0x1bbc   :  { %v4797_v10 = vmul.f32 1.442695, %v4795_v9 }
0x1bbd   :  { %v4794_v11 = vpop.xlane.xlu1 %4793 }
0x1bbe   :  { %6149 = vpow2.f32 %v4797_v10  ;;  %v4796_v47 = vsub.f32 %v4786_v52, %v4794_v11  ;;  %v5342_v10 = vld [vmem:[%s6827_s4 + $0x48] sm:$0xff]  ;;  %v5341_v11 = vld [vmem:[%s6827_s4 + $0x40] sm:$0xff] }
0x1bc0   :  { %v4799_v12 = vmul.f32 1.442695, %v4796_v47  ;;  %v5005_v47 = vrot.slane %v6546_v7, %v2438_v63 }
0x1bc2   :  { %6151 = vpow2.f32 %v4799_v12 }
0x1bcb   :  { %v6150_v53 = vpop.eup %6149 }
0x1bcc   :  { %v4801_v13 = vsel %vm507_vm2, %v6150_v53, 0.0 }
0x1bcd   :  { %4802 = vadd.xlane.f32.xlu0 %v4801_v13 }
0x1bcf   :  { %v6152_v14 = vpop.eup %6151 }
0x1bd0   :  { %v4804_v15 = vsel %vm507_vm2, %v6152_v14, 0.0 }
0x1bd1   :  { %4805 = vadd.xlane.f32.xlu1 %v4804_v15 }
0x1c56   :  { %v4803_v48 = vpop.xlane.xlu0 %4802 }
0x1c57   :  { %6153 = vrcp.f32 %v4803_v48 }
0x1c5a   :  { %v4806_v18 = vpop.xlane.xlu1 %4805 }
0x1c5b   :  { %6155 = vrcp.f32 %v4806_v18  ;;  %v5101_v18 = vrot.slane %v6546_v7, %v2533_v26 }
0x1c64   :  { %v6154_v19 = vpop.eup %6153 }
0x1c65   :  { %v4809_v20 = vmul.f32 %v6154_v19, %v6150_v53 }
0x1c67   :  { %6039 = vmatmul.mubr.msk.f32.vlgmr.msra.gmra.mxu0 %vm507_vm2, %v4809_v20 }
0x1c68   :  { %v6156_v21 = vpop.eup %6155  ;;  %6047 = vmatpush3.msra.mxu0 %v5338_v39 }
0x1c69   :  { %v4810_v23 = vmul.f32 %v6156_v21, %v6152_v14  ;;  %6048 = vmatprep.subr.mxu0 %v5337_v57 }
0x1c6a   :  { %6049 = vmatpush3.msra.mxu0 %v5337_v57 }
0x1c6b   :  { %6044 = vmatmul.mubr.msk.f32.vlgmr.msra.gmra.mxu1 %vm507_vm2, %v4810_v23  ;;  %6050 = vmatprep.subr.mxu0 %v5336_v61 }
0x1c6c   :  { %6051 = vmatpush3.msra.mxu0 %v5336_v61  ;;  %6058 = vmatpush3.msra.mxu1 %v5348_v17 }
0x1c6d   :  { %6052 = vmatprep.subr.mxu0 %v5335_v58  ;;  %6059 = vmatprep.subr.mxu1 %v5347_v36 }
0x1c6e   :  { %6053 = vmatpush3.msra.mxu0 %v5335_v58  ;;  %6060 = vmatpush3.msra.mxu1 %v5347_v36 }
0x1c6f   :  { %6061 = vmatprep.subr.mxu1 %v5346_v59 }
0x1c70   :  { %6062 = vmatpush3.msra.mxu1 %v5346_v59 }
0x1c71   :  { %6063 = vmatprep.subr.mxu1 %v5345_v22 }
0x1c72   :  { %6064 = vmatpush3.msra.mxu1 %v5345_v22 }
0x1c73   :  { %6065 = vmatprep.subr.mxu1 %v5344_v56 }
0x1c74   :  { %6066 = vmatpush3.msra.mxu1 %v5344_v56 }
0x1c75   :  { %6067 = vmatprep.subr.mxu1 %v5343_v5 }
0x1c76   :  { %6068 = vmatpush3.msra.mxu1 %v5343_v5 }
0x1c77   :  { %6069 = vmatprep.subr.mxu1 %v5342_v10 }
0x1c78   :  { %6070 = vmatpush3.msra.mxu1 %v5342_v10 }
0x1c79   :  { %6071 = vmatprep.subr.mxu1 %v5341_v11 }
0x1c7a   :  { %6072 = vmatpush3.msra.mxu1 %v5341_v11 }
0x1d27   :  { %v4880_v24 = vpop.f32.mrf.mxu0 }
0x1d28   :  { %v6739_v25 = vadd.f32 %v4880_v24, %v6713_v29 }
0x1d29   :  { %v6040_v27 = vpop.f32.mrf.mxu0 }
0x1d2a   :  { %v4959_v32 = vsel %vm54_vm0, %v6739_v25, 0.0 }
0x1d2b   :  { %4960 = vadd.xlane.f32.xlu0 %v4959_v32  ;;  %v4953_v28 = vpop.f32.mrf.mxu1 }
0x1d2c   :  { %v6744_v34 = vadd.f32 %v4953_v28, %v6716_v45 }
0x1d2d   :  { %v6045_v35 = vpop.f32.mrf.mxu1 }
0x1d2e   :  { %v4962_v38 = vsel %vm54_vm0, %v6744_v34, 0.0 }
0x1d2f   :  { %4963 = vadd.xlane.f32.xlu1 %v4962_v38 }
0x1db4   :  { %v4961_v41 = vpop.xlane.xlu0 %4960 }
0x1db5   :  { %v4965_v49 = vmul.f32 0.03125, %v4961_v41 }
0x1db7   :  { %v4967_v50 = vsub.f32 %v6739_v25, %v4965_v49 }
0x1db8   :  { %v4964_v51 = vpop.xlane.xlu1 %4963 }
0x1db9   :  { %v4966_v40 = vmul.f32 0.03125, %v4964_v51  ;;  %v4969_v16 = vmul.f32 %v4967_v50, %v4967_v50 }
0x1dbb   :  { %v4968_v29 = vsub.f32 %v6744_v34, %v4966_v40  ;;  %v4971_v54 = vsel %vm54_vm0, %v4969_v16, 0.0 }
0x1dbc   :  { %4972 = vadd.xlane.f32.xlu0 %v4971_v54 }
0x1dbd   :  { %v4970_v55 = vmul.f32 %v4968_v29, %v4968_v29 }
0x1dbf   :  { %v4974_v45 = vsel %vm54_vm0, %v4970_v55, 0.0  ;;  %v5351_v55 = vld [vmem:[%s6828_s5 + $0x10] sm:$0xff] }
0x1dc0   :  { %4975 = vadd.xlane.f32.xlu1 %v4974_v45  ;;  %v5216_v45 = vrot.slane %v5351_v55, %v6254_v31  ;;  %v5222_v57 = vrot.slane %v5351_v55, %v6262_v33 }
0x1e45   :  { %v4973_v60 = vpop.xlane.xlu0 %4972 }
0x1e46   :  { %v4977_v62 = vmul.f32 0.03125, %v4973_v60 }
0x1e48   :  { %v4979_v46 = vadd.f32 1e-06, %v4977_v62 }
0x1e49   :  { %v4976_v0 = vpop.xlane.xlu1 %4975 }
0x1e4a   :  { %6157 = vrsqrt.f32 %v4979_v46  ;;  %v4978_v37 = vmul.f32 0.03125, %v4976_v0 }
0x1e4c   :  { %v4980_v43 = vadd.f32 1e-06, %v4978_v37 }
0x1e4e   :  { %6159 = vrsqrt.f32 %v4980_v43 }
0x1e57   :  { %v6158_v1 = vpop.eup %6157 }
0x1e58   :  { %v4983_v44 = vmul.f32 %v6158_v1, %v4967_v50 }
0x1e5a   :  { %v4989_v4 = vmul.f32 %v4988_v2, %v4983_v44 }
0x1e5b   :  { %v6160_v52 = vpop.eup %6159 }
0x1e5c   :  { %v4984_v42 = vmul.f32 %v6160_v52, %v4968_v29  ;;  %v4995_v6 = vadd.f32 %v4994_v3, %v4989_v4 }
0x1e5e   :  { %v4990_v8 = vmul.f32 %v4988_v2, %v4984_v42  ;;  %6054 = vmatprep.mubr.msk.f32.mxu0 %vm54_vm0, %v4995_v6 }
0x1e60   :  { %v4996_v9 = vadd.f32 %v4994_v3, %v4990_v8 }
0x1e62   :  { %6055 = vmatmul.mubr.msk.f32.vlgmr.msra.gmra.mxu0 %vm54_vm0, %v4996_v9 }
0x1f22   :  { %v6056_v12 = vpop.f32.mrf.mxu0 }
0x1f23   :  { %v5084_v53 = vadd.f32 %v6056_v12, %v5005_v47 }
0x1f24   :  { %v5078_v13 = vpop.f32.mrf.mxu0 }
0x1f25   :  { %v5079_v14 = vadd.f32 %v5078_v13, %v5005_v47  ;;  %v5088_v48 = vmax.f32 %v5084_v53, 0.0 }
0x1f27   :  { %v5087_v15 = vmax.f32 %v5079_v14, 0.0 }
0x1f29   :  { %6073 = vmatprep.mubr.msk.f32.mxu1 %vm2535_vm3, %v5087_v15 }
0x1f2a   :  { %6074 = vmatmul.mubr.msk.f32.vlgmr.msra.gmra.mxu1 %vm2535_vm3, %v5088_v48 }
0x1fea   :  { %v6075_v19 = vpop.f32.mrf.mxu1 }
0x1feb   :  { %v5180_v20 = vadd.f32 %v6075_v19, %v5101_v18 }
0x1fec   :  { %v5174_v21 = vpop.f32.mrf.mxu1 }
0x1fed   :  { %v5175_v23 = vadd.f32 %v5174_v21, %v5101_v18  ;;  %v5184_v63 = vadd.f32 %v5180_v20, %v6744_v34 }
0x1fef   :  { %v5190_v24 = vsel %vm54_vm0, %v5184_v63, 0.0  ;;  %v5183_v27 = vadd.f32 %v5175_v23, %v6739_v25 }
0x1ff0   :  { %5191 = vadd.xlane.f32.xlu1 %v5190_v24 }
0x1ff1   :  { %v5187_v32 = vsel %vm54_vm0, %v5183_v27, 0.0 }
0x1ff2   :  { %5188 = vadd.xlane.f32.xlu0 %v5187_v32 }
0x2079   :  { %v5192_v28 = vpop.xlane.xlu1 %5191 }
0x207a   :  { %v5194_v35 = vmul.f32 0.03125, %v5192_v28 }
0x207b   :  { %v5189_v38 = vpop.xlane.xlu0 %5188 }
0x207c   :  { %v5196_v30 = vsub.f32 %v5184_v63, %v5194_v35  ;;  %v5193_v41 = vmul.f32 0.03125, %v5189_v38 }
0x207e   :  { %v5195_v26 = vsub.f32 %v5183_v27, %v5193_v41  ;;  %v5198_v7 = vmul.f32 %v5196_v30, %v5196_v30 }
0x2080   :  { %v5202_v49 = vsel %vm54_vm0, %v5198_v7, 0.0  ;;  %v5197_v50 = vmul.f32 %v5195_v26, %v5195_v26 }
0x2081   :  { %5203 = vadd.xlane.f32.xlu1 %v5202_v49 }
0x2082   :  { %v5199_v34 = vsel %vm54_vm0, %v5197_v50, 0.0 }
0x2083   :  { %5200 = vadd.xlane.f32.xlu0 %v5199_v34 }
0x210a   :  { %v5204_v51 = vpop.xlane.xlu1 %5203 }
0x210b   :  { %v5206_v25 = vmul.f32 0.03125, %v5204_v51 }
0x210c   :  { %v5201_v40 = vpop.xlane.xlu0 %5200 }
0x210d   :  { %v5208_v16 = vadd.f32 1e-06, %v5206_v25  ;;  %v5205_v29 = vmul.f32 0.03125, %v5201_v40 }
0x210f   :  { %6161 = vrsqrt.f32 %v5208_v16  ;;  %v5207_v54 = vadd.f32 1e-06, %v5205_v29 }
0x2111   :  { %6163 = vrsqrt.f32 %v5207_v54 }
0x211c   :  { %v6162_v39 = vpop.eup %6161 }
0x211d   :  { %v5212_v61 = vmul.f32 %v6162_v39, %v5196_v30 }
0x211e   :  { %v6164_v58 = vpop.eup %6163 }
0x211f   :  { %v5218_v17 = vmul.f32 %v5216_v45, %v5212_v61  ;;  %v5211_v36 = vmul.f32 %v6164_v58, %v5195_v26 }
0x2121   :  { %v5224_v59 = vadd.f32 %v5222_v57, %v5218_v17  ;;  %v5217_v22 = vmul.f32 %v5216_v45, %v5211_v36 }
0x2123   :  { %5226 = vst.msk [vmem:[%s6829_s6 + $0x8] sm:$0xff] %vm54_vm0, %v5224_v59  ;;  %v5223_v60 = vadd.f32 %v5222_v57, %v5217_v22 }
0x2125   :  { %5225 = vst.msk [vmem:[%s6829_s6] sm:$0xff] %vm54_vm0, %v5223_v60 }
0x2126   :  { %5231 = vsyncpa [#allocation3], 1 }

</bundles_post_ra>
